<compile_context>
chip_gen: v7x
topology: tpu7x:2x2x1
jax: 0.10.0
libtpu: 0.0.40
codegen_flags: <defaults>
</compile_context>

<pallas_src>
import functools

import jax
import jax.numpy as jnp
from jax import lax
from jax.experimental import pallas as pl
from jax.experimental.pallas import tpu as pltpu

_EPS = 1e-5  # PyTorch nn.LayerNorm default eps


def _vmem_capacity_bytes():
    try:
        return int(pltpu.get_tpu_info().vmem_capacity_bytes)
    except Exception:
        return 64 * 2 ** 20  # conservative (v7x per-TensorCore VMEM)


_VMEM_CAP = _vmem_capacity_bytes()
_TILE_CAP = 512 if _VMEM_CAP >= 96 * 2 ** 20 else 256   # v5e/v6e: 512, v7x: 256


# ------------------- kernel A: local_agg + norm1 + fused qkv ------------------- #
def qkv_local_kernel(x_ref, w1_ref, b1_ref, w2_ref, b2_ref, g1_ref, be1_ref,
                     wqkv_ref, bqkv_ref,
                     q_ref, k_ref, v_ref, local_ref, *, dim):
    C = dim
    x = x_ref[0]                                        # (C, Tn) f32, channel-major
    xb = x.astype(jnp.bfloat16)

    # local_agg on raw x: W1 @ x -> ReLU -> W2 @ .   (lane axis = points, dense)
    h = jnp.maximum(
        jnp.dot(w1_ref[...], xb, preferred_element_type=jnp.float32) + b1_ref[...],
        0.0)
    local = (jnp.dot(w2_ref[...], h.astype(jnp.bfloat16),
                     preferred_element_type=jnp.float32) + b2_ref[...])
    local_ref[0] = local.astype(local_ref.dtype)        # bf16 store, lane dense

    # norm1 over the channel (sublane) axis, f32 stats
    mu = jnp.mean(x, axis=0, keepdims=True)
    var = jnp.mean((x - mu) ** 2, axis=0, keepdims=True)
    xn = ((x - mu) * lax.rsqrt(var + _EPS) * g1_ref[...] + be1_ref[...]
          ).astype(jnp.bfloat16)

    # fused QKV projection: one (3C, C) x (C, Tn) matmul (384-wide, MXU-dense).
    # 1/sqrt(d) is pre-folded into the q rows of Wqkv / bqkv in the wrapper.
    qkv = (jnp.dot(wqkv_ref[...], xn, preferred_element_type=jnp.float32)
           + bqkv_ref[...]).astype(jnp.bfloat16)        # (3C, Tn)
    q_ref[0] = qkv[0 * C:1 * C]                         # static sublane slices (free)
    k_ref[0] = qkv[1 * C:2 * C]
    v_ref[0] = qkv[2 * C:3 * C]


# ------- kernel B: flash attention + head merge + norm2 + residual + proj ------- #
def flash_attn_epilogue_kernel(q_ref, k_ref, v_ref, local_ref, x_ref,
                               g2_ref, be2_ref, wp_ref, bp_ref, o_ref,
                               m_scr, l_scr, acc_scr, *, num_heads, head_dim):
    ki = pl.program_id(2)
    d = head_dim

    @pl.when(ki == 0)
    def _init():
        m_scr[...] = jnp.full(m_scr.shape, -jnp.inf, jnp.float32)
        l_scr[...] = jnp.zeros(l_scr.shape, jnp.float32)
        acc_scr[...] = jnp.zeros(acc_scr.shape, jnp.float32)

    # One head per (unrolled) iteration keeps s/p at (Tq, Tkv) f32 so the vreg
    # file is not spilled; per-head q/k/v are free sublane views of the
    # channel-major (C, T) blocks.
    for h in range(num_heads):
        qh = q_ref[0, h * d:(h + 1) * d, :]             # (d, Tq)  bf16
        kh = k_ref[0, h * d:(h + 1) * d, :]             # (d, Tkv) bf16
        vh = v_ref[0, h * d:(h + 1) * d, :]             # (d, Tkv) bf16

        # s = q^T k : contract the channel axis of both operands (trans-A matmul)
        s = lax.dot_general(qh, kh, (((0,), (0,)), ((), ())),
                            preferred_element_type=jnp.float32)   # (Tq, Tkv)

        m_prev = m_scr[h]                                # (Tq, 1)
        m_new = jnp.maximum(m_prev, jnp.max(s, axis=-1, keepdims=True))
        alpha = jnp.exp(m_prev - m_new)
        p = jnp.exp(s - m_new)
        l_scr[h] = alpha * l_scr[h] + jnp.sum(p, axis=-1, keepdims=True)
        # acc += p @ v^T : contract the kv axis (trans-B matmul) -> (Tq, d)
        acc_scr[h] = alpha * acc_scr[h] + lax.dot_general(
            p.astype(jnp.bfloat16), vh, (((1,), (1,)), ((), ())),
            preferred_element_type=jnp.float32)
        m_scr[h] = m_new

    @pl.when(ki == pl.num_programs(2) - 1)
    def _epilogue():
        # merge heads: lane concat + ONE clean (Tq, C) -> (C, Tq) transpose
        parts = [acc_scr[h] * pl.reciprocal(l_scr[h], approx=False)
                 for h in range(num_heads)]
        glob = jnp.concatenate(parts, axis=-1)           # (Tq, C) f32
        out_cn = jnp.transpose(glob) + local_ref[0].astype(jnp.float32)  # (C, Tq)

        # norm2 over the channel axis, then residual from the ORIGINAL [B,C,N] x
        mu = jnp.mean(out_cn, axis=0, keepdims=True)
        var = jnp.mean((out_cn - mu) ** 2, axis=0, keepdims=True)
        y = (out_cn - mu) * lax.rsqrt(var + _EPS) * g2_ref[...] + be2_ref[...]
        y = y + x_ref[0]                                 # f32 residual, no transpose

        o = (jnp.dot(wp_ref[...], y.astype(jnp.bfloat16),
                     preferred_element_type=jnp.float32) + bp_ref[...])
        o_ref[0] = o.astype(o_ref.dtype)                 # (C, Tq) lane-dense store


# ----------------------------------- wrapper ----------------------------------- #
def _bcast_spec(a):
    zeros = (0,) * a.ndim
    return pl.BlockSpec(a.shape, lambda *_, _z=zeros: _z)


def _compiler_params(dim_sems, block_bytes):
    # Cap the scoped-VMEM limit by the physical capacity of THIS generation
    # (<= ~48 MiB on v7x, more headroom on v5e/v6e's 128 MiB).
    hw_cap = int(_VMEM_CAP * 3 // 4)
    limit = int(min(hw_cap, max(32 * 2 ** 20, 6 * int(block_bytes))))
    return pltpu.CompilerParams(dimension_semantics=dim_sems,
                                vmem_limit_bytes=limit)


def _pick_tile(requested, n, cap):
    if requested is not None:
        assert n % requested == 0, (requested, n)
        assert requested == n or requested % 128 == 0, requested
        return requested
    if n <= cap:
        return n
    t = (cap // 128) * 128
    while t >= 128:
        if n % t == 0:
            return t
        t -= 128
    return n  # fallback: single full-length tile (always a legal block)


def fast_point_transformer_layer(x_bcn, params, num_heads, *,
                                 tile_n=None, tile_q=None, tile_kv=None):
    """x_bcn: [B, C, N] (PyTorch Conv1d layout). Returns [B, C, N] float32."""
    B, C, N = x_bcn.shape
    assert C % num_heads == 0
    d = C // num_heads
    assert d % 8 == 0, "head_dim must be a multiple of 8 for aligned head slicing"
    p = params
    hid = p["w1"].shape[0]
    f32, bf16 = jnp.float32, jnp.bfloat16

    tile_n = _pick_tile(tile_n, N, _TILE_CAP)
    tile_q = _pick_tile(tile_q, N, _TILE_CAP)
    tile_kv = _pick_tile(tile_kv, N, _TILE_CAP)
    # Note (v7x): B * (N // tile_q) should be >= 2 so both TensorCores get work.

    x = x_bcn.astype(f32)                                # stays [B, C, N]; no transpose

    # ------------------------- parameter prep (one-off) ------------------------ #
    scale = float(d) ** -0.5
    w1 = p["w1"].astype(bf16)                            # (hid, C)
    b1 = p["b1"].reshape(hid, 1).astype(f32)
    w2 = p["w2"].astype(bf16)                            # (C, hid)
    b2 = p["b2"].reshape(C, 1).astype(f32)
    g1 = p["g1"].reshape(C, 1).astype(f32)
    be1 = p["be1"].reshape(C, 1).astype(f32)
    g2 = p["g2"].reshape(C, 1).astype(f32)
    be2 = p["be2"].reshape(C, 1).astype(f32)
    wp = p["wp"].astype(bf16)                            # (C, C)
    bp = p["bp"].reshape(C, 1).astype(f32)

    # Conv1d weight (3C, C): fold 1/sqrt(d) into the q rows (first C) -- free.
    qscale = jnp.concatenate([jnp.full((C,), scale, f32),
                              jnp.ones((2 * C,), f32)]).reshape(3 * C, 1)
    wqkv = (p["wqkv"].astype(f32) * qscale).astype(bf16)          # (3C, C)
    bqkv = p["bqkv"].astype(f32).reshape(3 * C, 1) * qscale       # (3C, 1)

    # --------------- kernel A: local + norm1 + fused qkv (channel-major) -------- #
    a_params = [w1, b1, w2, b2, g1, be1, wqkv, bqkv]
    a_block_bytes = (tile_n * C * 4 + 4 * tile_n * C * 2
                     + sum(int(a.size) * a.dtype.itemsize for a in a_params))
    a_cost = pl.CostEstimate(
        flops=int(B * N * (4 * C * hid + 6 * C * C)),
        transcendentals=int(2 * B * N),
        bytes_accessed=int(B * N * C * (4 + 4 * 2)),
    )
    q, k, v, local = pl.pallas_call(
        functools.partial(qkv_local_kernel, dim=C),
        out_shape=tuple(jax.ShapeDtypeStruct((B, C, N), bf16) for _ in range(4)),
        grid=(B, N // tile_n),
        in_specs=[pl.BlockSpec((1, C, tile_n), lambda b, n: (b, 0, n))]
                 + [_bcast_spec(a) for a in a_params],
        out_specs=tuple(pl.BlockSpec((1, C, tile_n), lambda b, n: (b, 0, n))
                        for _ in range(4)),
        compiler_params=_compiler_params(("parallel", "parallel"), a_block_bytes),
        cost_estimate=a_cost,
    )(x, *a_params)

    # ----------- kernel B: flash attention + merge + norm2 + residual + proj ---------- #
    n_q = N // tile_q
    b_params = [g2, be2, wp, bp]
    b_block_bytes = ((tile_q + 2 * tile_kv) * C * 2          # q, k, v blocks (bf16)
                     + tile_q * C * 2                        # local block (bf16)
                     + 2 * tile_q * C * 4                    # x + out blocks (f32)
                     + 2 * num_heads * tile_q * 128 * 4      # m, l scratch (lane-padded)
                     + num_heads * tile_q * max(d, 128) * 4  # acc scratch (lane-padded)
                     + sum(int(a.size) * a.dtype.itemsize for a in b_params))
    b_cost = pl.CostEstimate(
        flops=int(B * (4 * N * N * C + 2 * N * C * C)),
        transcendentals=int(B * num_heads * N * N),
        bytes_accessed=int(B * N * C * 2 * (2 + 2 * n_q)     # q+local once, k/v re-streamed
                           + 2 * B * N * C * 4),             # x read + out write
    )
    out = pl.pallas_call(
        functools.partial(flash_attn_epilogue_kernel,
                          num_heads=num_heads, head_dim=d),
        out_shape=jax.ShapeDtypeStruct((B, C, N), f32),
        grid=(B, N // tile_q, N // tile_kv),
        in_specs=[
            pl.BlockSpec((1, C, tile_q), lambda b, qi, ki: (b, 0, qi)),    # q
            pl.BlockSpec((1, C, tile_kv), lambda b, qi, ki: (b, 0, ki)),   # k
            pl.BlockSpec((1, C, tile_kv), lambda b, qi, ki: (b, 0, ki)),   # v
            pl.BlockSpec((1, C, tile_q), lambda b, qi, ki: (b, 0, qi)),    # local
            pl.BlockSpec((1, C, tile_q), lambda b, qi, ki: (b, 0, qi)),    # x (residual)
        ] + [_bcast_spec(a) for a in b_params],
        out_specs=pl.BlockSpec((1, C, tile_q), lambda b, qi, ki: (b, 0, qi)),
        scratch_shapes=[
            pltpu.VMEM((num_heads, tile_q, 1), f32),   # running max
            pltpu.VMEM((num_heads, tile_q, 1), f32),   # running sum
            pltpu.VMEM((num_heads, tile_q, d), f32),   # output accumulator
        ],
        compiler_params=_compiler_params(
            ("parallel", "parallel", "arbitrary"), b_block_bytes),
        cost_estimate=b_cost,
    )(q, k, v, local, x, *b_params)

    return out                                           # already [B, C, N]


# ----------------------------- params & reference ----------------------------- #
def init_params(key, dim, reduction_ratio=4):
    hid = dim // reduction_ratio
    ks = jax.random.split(key, 8)

    def w(k, shape, fan_in):
        return jax.random.normal(k, shape, jnp.float32) / jnp.sqrt(float(fan_in))

    return dict(
        wqkv=w(ks[0], (3 * dim, dim), dim),
        bqkv=0.01 * jax.random.normal(ks[1], (3 * dim,), jnp.float32),
        w1=w(ks[2], (hid, dim), dim),
        b1=0.01 * jax.random.normal(ks[3], (hid,), jnp.float32),
        w2=w(ks[4], (dim, hid), hid),
        b2=0.01 * jax.random.normal(ks[5], (dim,), jnp.float32),
        wp=w(ks[6], (dim, dim), dim),
        bp=0.01 * jax.random.normal(ks[7], (dim,), jnp.float32),
        g1=jnp.ones((dim,), jnp.float32),
        be1=jnp.zeros((dim,), jnp.float32),
        g2=jnp.ones((dim,), jnp.float32),
        be2=jnp.zeros((dim,), jnp.float32),
    )


def ref_forward(x_bcn, p, num_heads):
    """Plain-JAX fp32 reference mirroring the PyTorch forward exactly."""
    B, C, N = x_bcn.shape
    d = C // num_heads
    xt = jnp.transpose(x_bcn, (0, 2, 1))                          # (B, N, C)

    def ln(z, g, b):
        mu = z.mean(-1, keepdims=True)
        var = ((z - mu) ** 2).mean(-1, keepdims=True)
        return (z - mu) / jnp.sqrt(var + _EPS) * g + b

    h = jax.nn.relu(jnp.einsum("bnc,oc->bno", xt, p["w1"]) + p["b1"])
    local = jnp.einsum("bno,co->bnc", h, p["w2"]) + p["b2"]
    xn = ln(xt, p["g1"], p["be1"])
    qkv = jnp.einsum("bnc,oc->bno", xn, p["wqkv"]) + p["bqkv"]    # (B, N, 3C)
    qkv = qkv.reshape(B, N, 3, num_heads, d).transpose(2, 0, 3, 1, 4)
    q, k, v = qkv[0], qkv[1], qkv[2]                              # (B, H, N, d)
    attn = jax.nn.softmax(
        jnp.einsum("bhnd,bhmd->bhnm", q, k) * d ** -0.5, axis=-1)
    g = jnp.einsum("bhnm,bhmd->bhnd", attn, v)
    glob = g.transpose(0, 2, 1, 3).reshape(B, N, C)               # 'b h n d -> b n (h d)'
    out = glob + local
    y = ln(out, p["g2"], p["be2"]) + xt
    y = jnp.einsum("bnc,oc->bno", y, p["wp"]) + p["bp"]
    return jnp.transpose(y, (0, 2, 1))


# -------------------------------------- main -------------------------------------- #
if __name__ == "__main__":
    B, C, N, H, R = 2, 128, 256, 4, 4          # C multiple of 128 -> lane-dense blocks
    key = jax.random.PRNGKey(0)
    kx, kp = jax.random.split(key)

    x = jax.random.normal(kx, (B, C, N), jnp.float32)
    params = init_params(kp, C, reduction_ratio=R)

    # tiles chosen so the flash grid exercises multiple query and KV steps
    out = fast_point_transformer_layer(x, params, H, tile_n=128, tile_q=128, tile_kv=128)
    out = jax.block_until_ready(out)

    ref = ref_forward(x, params, H)
    assert out.shape == (B, C, N)
    err = float(jnp.max(jnp.abs(out - ref)))
    ref_scale = float(jnp.max(jnp.abs(ref)))
    # bf16 matmul operands / bf16 intermediates (fp32 accumulation & stats)
    assert err <= 3e-2 * ref_scale + 1e-3, f"kernel mismatch: max|err|={err}, max|ref|={ref_scale}"
    print("KERNEL_OK")
</pallas_src>

<mosaic_0001>
module attributes {stable_mosaic.version = 11 : i64} {
  func.func @qkv_local_kernel(%arg0: i32, %arg1: i32, %arg2: memref<1x128x128xf32, #tpu.memory_space<vmem>>, %arg3: memref<32x128xbf16, #tpu.memory_space<vmem>>, %arg4: memref<32x1xf32, #tpu.memory_space<vmem>>, %arg5: memref<128x32xbf16, #tpu.memory_space<vmem>>, %arg6: memref<128x1xf32, #tpu.memory_space<vmem>>, %arg7: memref<128x1xf32, #tpu.memory_space<vmem>>, %arg8: memref<128x1xf32, #tpu.memory_space<vmem>>, %arg9: memref<384x128xbf16, #tpu.memory_space<vmem>>, %arg10: memref<384x1xf32, #tpu.memory_space<vmem>>, %arg11: memref<1x128x128xbf16, #tpu.memory_space<vmem>>, %arg12: memref<1x128x128xbf16, #tpu.memory_space<vmem>>, %arg13: memref<1x128x128xbf16, #tpu.memory_space<vmem>>, %arg14: memref<1x128x128xbf16, #tpu.memory_space<vmem>>) attributes {dimension_semantics = [#tpu.dimension_semantics<parallel>, #tpu.dimension_semantics<parallel>], iteration_bounds = array<i64: 2, 2>, scalar_prefetch = 0 : i64, scratch_operands = 0 : i64, tpu.core_type = #tpu.core_type<tc>, window_params = [{transform_indices = @transform_0, window_bounds = array<i64: 1, 128, 128>}, {pipeline_mode = #tpu.pipeline_mode<synchronous>, transform_indices = @transform_1, window_bounds = array<i64: 32, 128>}, {pipeline_mode = #tpu.pipeline_mode<synchronous>, transform_indices = @transform_2, window_bounds = array<i64: 32, 1>}, {pipeline_mode = #tpu.pipeline_mode<synchronous>, transform_indices = @transform_3, window_bounds = array<i64: 128, 32>}, {pipeline_mode = #tpu.pipeline_mode<synchronous>, transform_indices = @transform_4, window_bounds = array<i64: 128, 1>}, {pipeline_mode = #tpu.pipeline_mode<synchronous>, transform_indices = @transform_5, window_bounds = array<i64: 128, 1>}, {pipeline_mode = #tpu.pipeline_mode<synchronous>, transform_indices = @transform_6, window_bounds = array<i64: 128, 1>}, {pipeline_mode = #tpu.pipeline_mode<synchronous>, transform_indices = @transform_7, window_bounds = array<i64: 384, 128>}, {pipeline_mode = #tpu.pipeline_mode<synchronous>, transform_indices = @transform_8, window_bounds = array<i64: 384, 1>}, {transform_indices = @transform_9, window_bounds = array<i64: 1, 128, 128>}, {transform_indices = @transform_10, window_bounds = array<i64: 1, 128, 128>}, {transform_indices = @transform_11, window_bounds = array<i64: 1, 128, 128>}, {transform_indices = @transform_12, window_bounds = array<i64: 1, 128, 128>}]} {
    %c0 = arith.constant 0 : index
    %c0_0 = arith.constant 0 : index
    %c0_1 = arith.constant 0 : index
    %0 = vector.load %arg2[%c0, %c0_0, %c0_1] : memref<1x128x128xf32, #tpu.memory_space<vmem>>, vector<1x128x128xf32>
    %1 = vector.shape_cast %0 : vector<1x128x128xf32> to vector<128x128xf32>
    %2 = arith.truncf %1 : vector<128x128xf32> to vector<128x128xbf16>
    %c0_2 = arith.constant 0 : index
    %c0_3 = arith.constant 0 : index
    %3 = vector.load %arg3[%c0_2, %c0_3] : memref<32x128xbf16, #tpu.memory_space<vmem>>, vector<32x128xbf16>
    %cst = arith.constant dense<0.000000e+00> : vector<32x128xf32>
    %4 = tpu.matmul %3, %2, %cst {dimension_numbers = #tpu.dot_dimension_numbers<[1], [0], [0], [1], [0, 0, 1, 1], [], []>} : vector<32x128xbf16>, vector<128x128xbf16>, vector<32x128xf32> -> vector<32x128xf32>
    %c0_4 = arith.constant 0 : index
    %c0_5 = arith.constant 0 : index
    %5 = vector.load %arg4[%c0_4, %c0_5] : memref<32x1xf32, #tpu.memory_space<vmem>>, vector<32x1xf32>
    %6 = vector.broadcast %5 : vector<32x1xf32> to vector<32x128xf32>
    %7 = arith.addf %4, %6 : vector<32x128xf32>
    %cst_6 = arith.constant 0.000000e+00 : f32
    %8 = vector.broadcast %cst_6 : f32 to vector<32x128xf32>
    %9 = arith.maximumf %7, %8 : vector<32x128xf32>
    %c0_7 = arith.constant 0 : index
    %c0_8 = arith.constant 0 : index
    %10 = vector.load %arg5[%c0_7, %c0_8] : memref<128x32xbf16, #tpu.memory_space<vmem>>, vector<128x32xbf16>
    %11 = arith.truncf %9 : vector<32x128xf32> to vector<32x128xbf16>
    %cst_9 = arith.constant dense<0.000000e+00> : vector<128x128xf32>
    %12 = tpu.matmul %10, %11, %cst_9 {dimension_numbers = #tpu.dot_dimension_numbers<[1], [0], [0], [1], [0, 0, 1, 1], [], []>} : vector<128x32xbf16>, vector<32x128xbf16>, vector<128x128xf32> -> vector<128x128xf32>
    %c0_10 = arith.constant 0 : index
    %c0_11 = arith.constant 0 : index
    %13 = vector.load %arg6[%c0_10, %c0_11] : memref<128x1xf32, #tpu.memory_space<vmem>>, vector<128x1xf32>
    %14 = vector.broadcast %13 : vector<128x1xf32> to vector<128x128xf32>
    %15 = arith.addf %12, %14 : vector<128x128xf32>
    %16 = arith.truncf %15 : vector<128x128xf32> to vector<128x128xbf16>
    %c0_12 = arith.constant 0 : index
    %c0_13 = arith.constant 0 : index
    %c0_14 = arith.constant 0 : index
    %17 = vector.load %arg14[%c0_12, %c0_13, %c0_14] : memref<1x128x128xbf16, #tpu.memory_space<vmem>>, vector<1x128x128xbf16>
    %18 = vector.shape_cast %17 : vector<1x128x128xbf16> to vector<128x128xbf16>
    %19 = vector.shape_cast %16 : vector<128x128xbf16> to vector<1x128x128xbf16>
    tpu.vector_store %arg14[%c0_12, %c0_13, %c0_14], %19 {strides = array<i32>} : memref<1x128x128xbf16, #tpu.memory_space<vmem>>, vector<1x128x128xbf16>,
    %cst_15 = arith.constant dense<0.000000e+00> : vector<128xf32>
    %20 = vector.multi_reduction <add>, %1, %cst_15 [0] : vector<128x128xf32> to vector<128xf32>
    %21 = vector.shape_cast %20 : vector<128xf32> to vector<1x128xf32>
    %cst_16 = arith.constant 1.280000e+02 : f32
    %22 = vector.broadcast %cst_16 : f32 to vector<1x128xf32>
    %23 = arith.divf %21, %22 : vector<1x128xf32>
    %24 = vector.broadcast %23 : vector<1x128xf32> to vector<128x128xf32>
    %25 = arith.subf %1, %24 : vector<128x128xf32>
    %26 = arith.mulf %25, %25 : vector<128x128xf32>
    %cst_17 = arith.constant dense<0.000000e+00> : vector<128xf32>
    %27 = vector.multi_reduction <add>, %26, %cst_17 [0] : vector<128x128xf32> to vector<128xf32>
    %28 = vector.shape_cast %27 : vector<128xf32> to vector<1x128xf32>
    %cst_18 = arith.constant 1.280000e+02 : f32
    %29 = vector.broadcast %cst_18 : f32 to vector<1x128xf32>
    %30 = arith.divf %28, %29 : vector<1x128xf32>
    %31 = vector.broadcast %23 : vector<1x128xf32> to vector<128x128xf32>
    %32 = arith.subf %1, %31 : vector<128x128xf32>
    %cst_19 = arith.constant 9.99999974E-6 : f32
    %33 = vector.broadcast %cst_19 : f32 to vector<1x128xf32>
    %34 = arith.addf %30, %33 : vector<1x128xf32>
    %35 = math.rsqrt %34 : vector<1x128xf32>
    %36 = vector.broadcast %35 : vector<1x128xf32> to vector<128x128xf32>
    %37 = arith.mulf %32, %36 : vector<128x128xf32>
    %c0_20 = arith.constant 0 : index
    %c0_21 = arith.constant 0 : index
    %38 = vector.load %arg7[%c0_20, %c0_21] : memref<128x1xf32, #tpu.memory_space<vmem>>, vector<128x1xf32>
    %39 = vector.broadcast %38 : vector<128x1xf32> to vector<128x128xf32>
    %40 = arith.mulf %37, %39 : vector<128x128xf32>
    %c0_22 = arith.constant 0 : index
    %c0_23 = arith.constant 0 : index
    %41 = vector.load %arg8[%c0_22, %c0_23] : memref<128x1xf32, #tpu.memory_space<vmem>>, vector<128x1xf32>
    %42 = vector.broadcast %41 : vector<128x1xf32> to vector<128x128xf32>
    %43 = arith.addf %40, %42 : vector<128x128xf32>
    %44 = arith.truncf %43 : vector<128x128xf32> to vector<128x128xbf16>
    %c0_24 = arith.constant 0 : index
    %c0_25 = arith.constant 0 : index
    %45 = vector.load %arg9[%c0_24, %c0_25] : memref<384x128xbf16, #tpu.memory_space<vmem>>, vector<384x128xbf16>
    %cst_26 = arith.constant dense<0.000000e+00> : vector<384x128xf32>
    %46 = tpu.matmul %45, %44, %cst_26 {dimension_numbers = #tpu.dot_dimension_numbers<[1], [0], [0], [1], [0, 0, 1, 1], [], []>} : vector<384x128xbf16>, vector<128x128xbf16>, vector<384x128xf32> -> vector<384x128xf32>
    %c0_27 = arith.constant 0 : index
    %c0_28 = arith.constant 0 : index
    %47 = vector.load %arg10[%c0_27, %c0_28] : memref<384x1xf32, #tpu.memory_space<vmem>>, vector<384x1xf32>
    %48 = vector.broadcast %47 : vector<384x1xf32> to vector<384x128xf32>
    %49 = arith.addf %46, %48 : vector<384x128xf32>
    %50 = arith.truncf %49 : vector<384x128xf32> to vector<384x128xbf16>
    %51 = vector.extract_strided_slice %50 {offsets = [0, 0], sizes = [128, 128], strides = [1, 1]} : vector<384x128xbf16> to vector<128x128xbf16>
    %c0_29 = arith.constant 0 : index
    %c0_30 = arith.constant 0 : index
    %c0_31 = arith.constant 0 : index
    %52 = vector.load %arg11[%c0_29, %c0_30, %c0_31] : memref<1x128x128xbf16, #tpu.memory_space<vmem>>, vector<1x128x128xbf16>
    %53 = vector.shape_cast %52 : vector<1x128x128xbf16> to vector<128x128xbf16>
    %54 = vector.shape_cast %51 : vector<128x128xbf16> to vector<1x128x128xbf16>
    tpu.vector_store %arg11[%c0_29, %c0_30, %c0_31], %54 {strides = array<i32>} : memref<1x128x128xbf16, #tpu.memory_space<vmem>>, vector<1x128x128xbf16>,
    %55 = vector.extract_strided_slice %50 {offsets = [128, 0], sizes = [128, 128], strides = [1, 1]} : vector<384x128xbf16> to vector<128x128xbf16>
    %c0_32 = arith.constant 0 : index
    %c0_33 = arith.constant 0 : index
    %c0_34 = arith.constant 0 : index
    %56 = vector.load %arg12[%c0_32, %c0_33, %c0_34] : memref<1x128x128xbf16, #tpu.memory_space<vmem>>, vector<1x128x128xbf16>
    %57 = vector.shape_cast %56 : vector<1x128x128xbf16> to vector<128x128xbf16>
    %58 = vector.shape_cast %55 : vector<128x128xbf16> to vector<1x128x128xbf16>
    tpu.vector_store %arg12[%c0_32, %c0_33, %c0_34], %58 {strides = array<i32>} : memref<1x128x128xbf16, #tpu.memory_space<vmem>>, vector<1x128x128xbf16>,
    %59 = vector.extract_strided_slice %50 {offsets = [256, 0], sizes = [128, 128], strides = [1, 1]} : vector<384x128xbf16> to vector<128x128xbf16>
    %c0_35 = arith.constant 0 : index
    %c0_36 = arith.constant 0 : index
    %c0_37 = arith.constant 0 : index
    %60 = vector.load %arg13[%c0_35, %c0_36, %c0_37] : memref<1x128x128xbf16, #tpu.memory_space<vmem>>, vector<1x128x128xbf16>
    %61 = vector.shape_cast %60 : vector<1x128x128xbf16> to vector<128x128xbf16>
    %62 = vector.shape_cast %59 : vector<128x128xbf16> to vector<1x128x128xbf16>
    tpu.vector_store %arg13[%c0_35, %c0_36, %c0_37], %62 {strides = array<i32>} : memref<1x128x128xbf16, #tpu.memory_space<vmem>>, vector<1x128x128xbf16>,
    return
  }
  func.func @transform_0(%arg0: i32, %arg1: i32) -> (i32, i32, i32) {
    %c0_i32 = arith.constant 0 : i32
    %c0_i32_0 = arith.constant 0 : i32
    return %arg0, %c0_i32, %arg1 : i32, i32, i32
  }
  func.func @transform_1(%arg0: i32, %arg1: i32) -> (i32, i32) {
    %c0_i32 = arith.constant 0 : i32
    %c0_i32_0 = arith.constant 0 : i32
    %c0_i32_1 = arith.constant 0 : i32
    return %c0_i32, %c0_i32_0 : i32, i32
  }
  func.func @transform_2(%arg0: i32, %arg1: i32) -> (i32, i32) {
    %c0_i32 = arith.constant 0 : i32
    %c0_i32_0 = arith.constant 0 : i32
    %c0_i32_1 = arith.constant 0 : i32
    return %c0_i32, %c0_i32_0 : i32, i32
  }
  func.func @transform_3(%arg0: i32, %arg1: i32) -> (i32, i32) {
    %c0_i32 = arith.constant 0 : i32
    %c0_i32_0 = arith.constant 0 : i32
    %c0_i32_1 = arith.constant 0 : i32
    return %c0_i32, %c0_i32_0 : i32, i32
  }
  func.func @transform_4(%arg0: i32, %arg1: i32) -> (i32, i32) {
    %c0_i32 = arith.constant 0 : i32
    %c0_i32_0 = arith.constant 0 : i32
    %c0_i32_1 = arith.constant 0 : i32
    return %c0_i32, %c0_i32_0 : i32, i32
  }
  func.func @transform_5(%arg0: i32, %arg1: i32) -> (i32, i32) {
    %c0_i32 = arith.constant 0 : i32
    %c0_i32_0 = arith.constant 0 : i32
    %c0_i32_1 = arith.constant 0 : i32
    return %c0_i32, %c0_i32_0 : i32, i32
  }
  func.func @transform_6(%arg0: i32, %arg1: i32) -> (i32, i32) {
    %c0_i32 = arith.constant 0 : i32
    %c0_i32_0 = arith.constant 0 : i32
    %c0_i32_1 = arith.constant 0 : i32
    return %c0_i32, %c0_i32_0 : i32, i32
  }
  func.func @transform_7(%arg0: i32, %arg1: i32) -> (i32, i32) {
    %c0_i32 = arith.constant 0 : i32
    %c0_i32_0 = arith.constant 0 : i32
    %c0_i32_1 = arith.constant 0 : i32
    return %c0_i32, %c0_i32_0 : i32, i32
  }
  func.func @transform_8(%arg0: i32, %arg1: i32) -> (i32, i32) {
    %c0_i32 = arith.constant 0 : i32
    %c0_i32_0 = arith.constant 0 : i32
    %c0_i32_1 = arith.constant 0 : i32
    return %c0_i32, %c0_i32_0 : i32, i32
  }
  func.func @transform_9(%arg0: i32, %arg1: i32) -> (i32, i32, i32) {
    %c0_i32 = arith.constant 0 : i32
    %c0_i32_0 = arith.constant 0 : i32
    return %arg0, %c0_i32, %arg1 : i32, i32, i32
  }
  func.func @transform_10(%arg0: i32, %arg1: i32) -> (i32, i32, i32) {
    %c0_i32 = arith.constant 0 : i32
    %c0_i32_0 = arith.constant 0 : i32
    return %arg0, %c0_i32, %arg1 : i32, i32, i32
  }
  func.func @transform_11(%arg0: i32, %arg1: i32) -> (i32, i32, i32) {
    %c0_i32 = arith.constant 0 : i32
    %c0_i32_0 = arith.constant 0 : i32
    return %arg0, %c0_i32, %arg1 : i32, i32, i32
  }
  func.func @transform_12(%arg0: i32, %arg1: i32) -> (i32, i32, i32) {
    %c0_i32 = arith.constant 0 : i32
    %c0_i32_0 = arith.constant 0 : i32
    return %arg0, %c0_i32, %arg1 : i32, i32, i32
  }
}

</mosaic_0001>

<bundles_post_ra>
// kernel: tpu_custom_call.1
= control target key start
LH: loop header
LB: loop body
LE: loop exit
PB: predicated region body
PF: predicated region fallthrough
CT: control target
= control target key end

     0   :  { %s4659_s0 = inlined_call_operand.vmem [shape: f32[2,128,256], index: 0, kind: input, shape index: {}]   ;;  %s4660_s1 = inlined_call_operand.vmem [shape: bf16[32,128], index: 1, kind: input, shape index: {}]   ;;  %s4661_s2 = inlined_call_operand.vmem [shape: f32[32,1], index: 2, kind: input, shape index: {}]   ;;  %s4662_s3 = inlined_call_operand.vmem [shape: bf16[128,32], index: 3, kind: input, shape index: {}]   ;;  %s4663_s4 = inlined_call_operand.vmem [shape: f32[128,1], index: 4, kind: input, shape index: {}]   ;;  %s4664_s5 = inlined_call_operand.vmem [shape: f32[128,1], index: 5, kind: input, shape index: {}]   ;;  %s4665_s6 = inlined_call_operand.vmem [shape: f32[128,1], index: 6, kind: input, shape index: {}]   ;;  %s4666_s7 = inlined_call_operand.vmem [shape: bf16[384,128], index: 7, kind: input, shape index: {}]   ;;  %s4667_s8 = inlined_call_operand.vmem [shape: f32[384,1], index: 8, kind: input, shape index: {}]   ;;  %s4668_s9 = inlined_call_operand.hbm [shape: bf16[2,128,256], index: 9, kind: output, shape index: {0}]   ;;  %s4669_s10 = inlined_call_operand.hbm [shape: bf16[2,128,256], index: 10, kind: output, shape index: {1}]   ;;  %s4670_s11 = inlined_call_operand.hbm [shape: bf16[2,128,256], index: 11, kind: output, shape index: {2}]   ;;  %s4671_s12 = inlined_call_operand.hbm [shape: bf16[2,128,256], index: 12, kind: output, shape index: {3}]  }
   0x1   :  { %4686 = sst [smem:[#allocation17_spill]] %s4659_s0 }
   0x2   :  { %4687 = sst [smem:[#allocation18_spill]] %s4660_s1 }
   0x3   :  { %4688 = sst [smem:[#allocation19_spill]] %s4661_s2 }
   0x4   :  { %4689 = sst [smem:[#allocation20_spill]] %s4662_s3 }
   0x5   :  { %4690 = sst [smem:[#allocation21_spill]] %s4669_s10 }
   0x6   :  { %4691 = sst [smem:[#allocation22_spill]] %s4670_s11 }
   0x7   :  { %18 = vsyncpa [#allocation4], 0 }
   0x8   :  { %20 = vsyncpa [#allocation4 + $0x1], 0 }
   0x9   :  { %21 = vsyncpa [#allocation6], 0 }
   0xa   :  { %23 = vsyncpa [#allocation6 + $0x1], 0 }
   0xb   :  { %24 = vsyncpa [#allocation9], 0 }
   0xc   :  { %26 = vsyncpa [#allocation9 + $0x1], 0  ;;  %s3513_s21 = smov 0   ;;  %s3515_s22 = smov 0  }
   0xd   :  { %s3517_s23 = smov 0   ;;  %s3519_s24 = smov 0  }
   0xe   :  { %s3521_s25 = smov 0   ;;  %s3523_s26 = smov 0  }
   0xf   :  { %s3525_s27 = smov 0   ;;  %s3527_s28 = smov 0  }
  0x10 LB: > { %4692 = sst [smem:[#allocation13_spill]] %s3410_s21  ;;  %s4675_s29 = sadd.s32 4294967295, %s3438_s28   ;;  %s3438_s28 = sphi %s3527_s28, %s32_s28   ;;  %s3434_s27 = sphi %s3525_s27, %s4725_s27   ;;  %s3430_s26 = sphi %s3523_s26, %s4724_s26   ;;  %s3426_s25 = sphi %s3521_s25, %s4723_s25   ;;  %s3422_s24 = sphi %s3519_s24, %s4722_s24   ;;  %s3418_s23 = sphi %s3517_s23, %s4721_s23   ;;  %s3414_s22 = sphi %s3515_s22, %s4720_s22   ;;  %s3410_s21 = sphi %s3513_s21, %s4719_s21  }
  0x11   : > { %s4674_s30 = sadd.s32 4294967294, %s3438_s28   ;;  %s41_s13 = sadd.s32 1, %s3430_s26 }
  0x12   : > { %p42_p0 = scmp.ge.s32.totalorder %s41_s13, 2  ;;  %s44_s14 = sadd.s32 1, %s3434_s27 }
  0x13   : > { %p60_p1 = scmp.ne.s32.totalorder %s3418_s23, %s3414_s22  ;;  %p61_p2 = scmp.eq.s32.totalorder %s3438_s28, 0 }
  0x14   : > { %s4727_s13 = smov (%p42_p0, %s41_s13), 0  ;;  %s4729_s14 = smov (!%p42_p0, %s44_s14), %s3434_s27 }
  0x15   : > { %4693 = sst [smem:[#allocation14_spill]] %s4727_s13  ;;  %s49_s15 = ssub.s32 %s3430_s26, %s4727_s13 }
  0x16   : > { %p3565_p3 = por %p61_p2, %p60_p1  ;;  %p46_p4 = scmp.ge.s32.totalorder %s4729_s14, 2 }
  0x17   : > { %p260_p5 = scmp.eq.s32.totalorder %s4675_s29, 3  ;;  %p265_p6 = scmp.ne.s32.totalorder %s3414_s22, %s3410_s21 }
  0x18   : > { %p266_p7 = scmp.eq.s32.totalorder %s4674_s30, 3  ;;  %s4731_s14 = smov (%p46_p4, %s4729_s14), 0 }
  0x19   : > { %4695 = sst [smem:[#allocation15_spill]] %s4731_s14  ;;  %p3577_p8 = por %p260_p5, %p60_p1 }
  0x1a   : > { %p3581_p9 = por %p266_p7, %p265_p6  ;;  %s48_s19 = ssub.s32 %s3434_s27, %s4731_s14 }
  0x1b   : > { %s50_s20 = sor.u32 %s49_s15, %s48_s19  ;;  %s53_s13 = sadd.s32 1, %s3418_s23 }
  0x1c   : > { %s4697_s18 = scalar_select %p3581_p9, 1, 0 }
  0x1d   : > { %p51_p10 = scmp.eq.s32.totalorder %s50_s20, 0  ;;  %p2570_p11 = scmp.ge.s32.totalorder %s3438_s28, 4 }
  0x1e   : > { %4698 = sst [smem:[#allocation16_spill]] %s4697_s18 }
  0x1f   : > { %s3589_s11 = scalar_select %p51_p10, %s3418_s23, %s53_s13  }
  0x20   : > { %390 = sbr.rel (%p2570_p11) target bundleno = 57 (0x39), region = 48 }
  0x27   : > { %393 = sbr.rel (!%p3565_p3) target bundleno = 57 (0x39), region = 52  ;;  %s395_s30 = sand.u32 (%p3565_p3), 1, %s3418_s23  }
  0x28   : > { %s2572_s29 = sshll.u32 (%p3565_p3), %s3434_s27, 5  ;;  %s2571_s21 = sshll.u32 (%p3565_p3), %s395_s30, 7 }
  0x29   : > { %s399_s10 = sadd.s32 (%p3565_p3), %s3430_s26, %s2572_s29  ;;  %s4699_s0 = sld [smem:[#allocation17_spill]] (%p3565_p3) }
  0x2a   : > { %s2573_s18 = sshll.u32 (%p3565_p3), %s399_s10, 3  ;;  %s397_s30 = scalar_lea.vmem (%p3565_p3), [#allocation2], %s2571_s21 }
  0x2f   : > { %s3600_s19 = scalar_lea.vmem %s4699_s0, %s2573_s18 }
  0x30   : > { %v459_v0 = vld [vmem:[%s3600_s19] sm:$0xff]  ;;  %v461_v1 = vld [vmem:[%s3600_s19 + $0x10] sm:$0xff] }
  0x31   : > { %v463_v2 = vld [vmem:[%s3600_s19 + $0x20] sm:$0xff]  ;;  %460 = vst [vmem:[%s397_s30] sm:$0xff] %v459_v0  ;;  %462 = vst [vmem:[%s397_s30 + $0x8] sm:$0xff] %v461_v1  ;;  %v465_v3 = vld [vmem:[%s3600_s19 + $0x30] sm:$0xff] }
  0x32   : > { %464 = vst [vmem:[%s397_s30 + $0x10] sm:$0xff] %v463_v2  ;;  %v467_v4 = vld [vmem:[%s3600_s19 + $0x40] sm:$0xff]  ;;  %v469_v5 = vld [vmem:[%s3600_s19 + $0x50] sm:$0xff]  ;;  %466 = vst [vmem:[%s397_s30 + $0x18] sm:$0xff] %v465_v3 }
  0x33   : > { %468 = vst [vmem:[%s397_s30 + $0x20] sm:$0xff] %v467_v4  ;;  %470 = vst [vmem:[%s397_s30 + $0x28] sm:$0xff] %v469_v5  ;;  %v471_v6 = vld [vmem:[%s3600_s19 + $0x60] sm:$0xff]  ;;  %v473_v7 = vld [vmem:[%s3600_s19 + $0x70] sm:$0xff] }
  0x34   : > { %v475_v8 = vld [vmem:[%s3600_s19 + $0x80] sm:$0xff]  ;;  %472 = vst [vmem:[%s397_s30 + $0x30] sm:$0xff] %v471_v6  ;;  %474 = vst [vmem:[%s397_s30 + $0x38] sm:$0xff] %v473_v7  ;;  %v477_v9 = vld [vmem:[%s3600_s19 + $0x90] sm:$0xff] }
  0x35   : > { %476 = vst [vmem:[%s397_s30 + $0x40] sm:$0xff] %v475_v8  ;;  %v479_v10 = vld [vmem:[%s3600_s19 + $0xa0] sm:$0xff]  ;;  %v481_v11 = vld [vmem:[%s3600_s19 + $0xb0] sm:$0xff]  ;;  %478 = vst [vmem:[%s397_s30 + $0x48] sm:$0xff] %v477_v9 }
  0x36   : > { %480 = vst [vmem:[%s397_s30 + $0x50] sm:$0xff] %v479_v10  ;;  %482 = vst [vmem:[%s397_s30 + $0x58] sm:$0xff] %v481_v11  ;;  %v483_v12 = vld [vmem:[%s3600_s19 + $0xc0] sm:$0xff]  ;;  %v485_v13 = vld [vmem:[%s3600_s19 + $0xd0] sm:$0xff] }
  0x37   : > { %v487_v14 = vld [vmem:[%s3600_s19 + $0xe0] sm:$0xff]  ;;  %484 = vst [vmem:[%s397_s30 + $0x60] sm:$0xff] %v483_v12  ;;  %486 = vst [vmem:[%s397_s30 + $0x68] sm:$0xff] %v485_v13  ;;  %v489_v15 = vld [vmem:[%s3600_s19 + $0xf0] sm:$0xff] }
  0x38   : > { %488 = vst [vmem:[%s397_s30 + $0x70] sm:$0xff] %v487_v14  ;;  %490 = vst [vmem:[%s397_s30 + $0x78] sm:$0xff] %v489_v15 }
  0x39 PF: > { %p2574_p12 = scmp.ge.s32.totalorder %s3438_s28, 1  ;;  %p495_p13 = scmp.lt.s32.totalorder %s3438_s28, 5 }
  0x3b   : > { %p496_p0 = pnand %p2574_p12, %p495_p13 }
  0x3c   : > { %s4700_s2 = sld [smem:[#allocation19_spill]] (!%p496_p0)  ;;  %s3627_s14 = sand.u32 (!%p496_p0), 1, %s3414_s22   ;;  %v3440_v18 = vmov (!%p496_p0), 0   ;;  %v695_v31 = vld [vmem:[%s4663_s4 + $0x8] sm:$0xff] (!%p496_p0)  ;;  %v694_v32 = vld [vmem:[%s4663_s4] sm:$0xff] (!%p496_p0)  ;;  %v1130_v53 = vld [vmem:[%s4664_s5 + $0x18] sm:$0xff] (!%p496_p0) }
  0x3d   : > { %499 = sbr.rel (%p496_p0) target bundleno = 655 (0x28f), region = 90  ;;  %3215 = vset.pattern.permute.xlu1 (!%p496_p0), %v3440_v18  ;;  %3214 = vset.pattern.permute.xlu0 (!%p496_p0), %v3440_v18  ;;  %s2575_s16 = sshll.u32 (!%p496_p0), %s3627_s14, 7  ;;  %v1128_v38 = vld [vmem:[%s4664_s5 + $0x8] sm:$0xff] (!%p496_p0)  ;;  %v1127_v39 = vld [vmem:[%s4664_s5] sm:$0xff] (!%p496_p0)  ;;  %v1129_v54 = vld [vmem:[%s4664_s5 + $0x10] sm:$0xff] (!%p496_p0)  ;;  %vm830_vm0 = vcmask (!%p496_p0), 261120  }
  0x3e   : > { %s3636_s30 = scalar_lea.vmem (!%p496_p0), [#allocation2], %s2575_s16  ;;  %s4701_s1 = sld [smem:[#allocation18_spill]] (!%p496_p0)  ;;  %v1240_v46 = vld [vmem:[%s4665_s6 + $0x8] sm:$0xff] (!%p496_p0)  ;;  %v1239_v47 = vld [vmem:[%s4665_s6] sm:$0xff] (!%p496_p0)  ;;  %v1242_v60 = vld [vmem:[%s4665_s6 + $0x18] sm:$0xff] (!%p496_p0) }
  0x3f   : > { %v3639_v21 = vld [vmem:[%s3636_s30] sm:$0xff] (!%p496_p0)  ;;  %v3642_v22 = vld [vmem:[%s3636_s30 + $0x8] sm:$0xff] (!%p496_p0)  ;;  %v3645_v23 = vld [vmem:[%s3636_s30 + $0x10] sm:$0xff] (!%p496_p0)  ;;  %s4702_s3 = sld [smem:[#allocation20_spill]] (!%p496_p0)  ;;  %s4371_s29 = sshll.u32 (!%p496_p0), %s3627_s14, 6 }
  0x40   : > { %v575_v24 = vpack.c.bf16 (!%p496_p0), %v3642_v22, %v3639_v21  ;;  %v1032_v25 = vadd.f32 (!%p496_p0), %v3642_v22, %v3639_v21  ;;  %v3652_v26 = vld [vmem:[%s3636_s30 + $0x18] sm:$0xff] (!%p496_p0)  ;;  %v3657_v28 = vld [vmem:[%s3636_s30 + $0x20] sm:$0xff] (!%p496_p0)  ;;  %v3660_v29 = vld [vmem:[%s3636_s30 + $0x28] sm:$0xff] (!%p496_p0)  ;;  %s4374_s13 = scalar_lea.vmem (!%p496_p0), [#allocation3], %s4371_s29  ;;  %s2690_s16 = sshll.u32 (!%p496_p0), %s3426_s25, 5 }
  0x41   : > { %v576_v27 = vpack.c.bf16 (!%p496_p0), %v3652_v26, %v3645_v23  ;;  %v577_v34 = vpack.c.bf16 (!%p496_p0), %v3660_v29, %v3657_v28  ;;  %v3673_v35 = vld [vmem:[%s3636_s30 + $0x30] sm:$0xff] (!%p496_p0)  ;;  %v3676_v36 = vld [vmem:[%s3636_s30 + $0x38] sm:$0xff] (!%p496_p0)  ;;  %v3692_v43 = vld [vmem:[%s3636_s30 + $0x40] sm:$0xff] (!%p496_p0)  ;;  %s2331_s18 = sadd.s32 (!%p496_p0), %s3422_s24, %s2690_s16  ;;  %s2334_s20 = sshll.u32 (!%p496_p0), %s4374_s13, 4  ;;  %s4387_s20 = int_to_ptr.vmem [resolvable:$true] %s2334_s20 }
  0x42   : > { %v589_v16 = vld [vmem:[%s4700_s2 + $0x10] sm:$0xff] (!%p496_p0)  ;;  %v587_v17 = vld [vmem:[%s4700_s2] sm:$0xff] (!%p496_p0)  ;;  %v590_v19 = vld [vmem:[%s4700_s2 + $0x18] sm:$0xff] (!%p496_p0)  ;;  %v1033_v30 = vadd.f32 (!%p496_p0), %v1032_v25, %v3645_v23  ;;  %3004 = vmatprep.subr.bf16.mxu0 (!%p496_p0), %v575_v24  ;;  %v578_v42 = vpack.c.bf16 (!%p496_p0), %v3676_v36, %v3673_v35  ;;  %s4385_s15 = sshll.u32 (!%p496_p0), %s2331_s18, 6  ;;  %s3252_s10 = scalar_lea.vmem (!%p496_p0), %s4387_s20, 1024 }
  0x43   : > { %603 = vperm.xlu1 (!%p496_p0), %3215, %v589_v16   ;;  %593 = vperm.xlu0 (!%p496_p0), %3214, %v587_v17   ;;  %v588_v20 = vld [vmem:[%s4700_s2 + $0x8] sm:$0xff] (!%p496_p0)  ;;  %v3708_v50 = vld [vmem:[%s3636_s30 + $0x50] sm:$0xff] (!%p496_p0)  ;;  %v3711_v51 = vld [vmem:[%s3636_s30 + $0x58] sm:$0xff] (!%p496_p0)  ;;  %p3253_p1 = scmp.ne.s32.totalorder (!%p496_p0), %s4387_s20, %s3252_s10  ;;  %s3441_s21 = smov (!%p496_p0), [#allocation3]  }
  0x44   : > { %3005 = vmatpush3.bf16.msra.mxu0 %v575_v24  ;;  %v1034_v33 = vadd.f32 %v1033_v30, %v3652_v26  ;;  %v3216_v41 = vld [vmem:[%s4701_s1] sm:$0xff]   ;;  %v3695_v44 = vld [vmem:[%s3636_s30 + $0x48] sm:$0xff]  ;;  %v580_v56 = vpack.c.bf16 %v3711_v51, %v3708_v50  ;;  %v1241_v61 = vld [vmem:[%s4665_s6 + $0x10] sm:$0xff]  ;;  %s3256_s16 = sshll.u32 %s3441_s21, 4  ;;  %s3257_s16 = int_to_ptr.vmem [resolvable:$false] %s3256_s16 }
  0x45   : > { %3006 = vmatprep.subr.bf16.mxu0 %v576_v27  ;;  %3020 = vmatprep.mubr.bf16.mxu0 %v3216_v41  ;;  %v579_v49 = vpack.c.bf16 %v3695_v44, %v3692_v43  ;;  %v3724_v57 = vld [vmem:[%s3636_s30 + $0x60] sm:$0xff]  ;;  %v3727_v58 = vld [vmem:[%s3636_s30 + $0x68] sm:$0xff]  ;;  %v3740_v0 = vld [vmem:[%s3636_s30 + $0x70] sm:$0xff]  ;;  %p3254_p2 = pnand %p3253_p1, %p3577_p8  ;;  %s3258_s18 = scalar_lea.vmem %s3257_s16, 2048 }
  0x46   : > { %v1035_v37 = vadd.f32 %v1034_v33, %v3657_v28  ;;  %v581_v63 = vpack.c.bf16 %v3727_v58, %v3724_v57  ;;  %v3743_v1 = vld [vmem:[%s3636_s30 + $0x78] sm:$0xff]  ;;  %v1132_v3 = vld [vmem:[%s4664_s5 + $0x28] sm:$0xff]  ;;  %v1131_v4 = vld [vmem:[%s4664_s5 + $0x20] sm:$0xff]  ;;  %s4393_s30 = scalar_lea.hbm %s4668_s9, %s4385_s15  ;;  %p3259_p4 = scmp.lt.s32.totalorder %s4387_s20, %s3257_s16 }
  0x47   : > { %608 = vperm.xlu1 %3215, %v590_v19   ;;  %598 = vperm.xlu0 %3214, %v588_v20   ;;  %v582_v6 = vpack.c.bf16 %v3743_v1, %v3740_v0  ;;  %v1244_v8 = vld [vmem:[%s4665_s6 + $0x28] sm:$0xff]  ;;  %v1243_v9 = vld [vmem:[%s4665_s6 + $0x20] sm:$0xff]  ;;  %v1134_v11 = vld [vmem:[%s4664_s5 + $0x38] sm:$0xff]  ;;  %p3255_p3 = pneg %p3254_p2  ;;  %p3260_p5 = scmp.lt.s32.totalorder %s3258_s18, %s3252_s10 }
  0x48   : > { %v1036_v40 = vadd.f32 %v1035_v37, %v3660_v29  ;;  %3007 = vmatpush3.bf16.msra.mxu0 %v576_v27  ;;  %v1133_v13 = vld [vmem:[%s4664_s5 + $0x30] sm:$0xff]  ;;  %v3217_v14 = vld [vmem:[%s4701_s1 + $0x8] sm:$0xff]   ;;  %v1246_v17 = vld [vmem:[%s4665_s6 + $0x38] sm:$0xff] }
  0x49   : > { %3008 = vmatprep.subr.bf16.mxu0 %v577_v34  ;;  %v1245_v18 = vld [vmem:[%s4665_s6 + $0x30] sm:$0xff]  ;;  %v1136_v24 = vld [vmem:[%s4664_s5 + $0x48] sm:$0xff]  ;;  %v1135_v25 = vld [vmem:[%s4664_s5 + $0x40] sm:$0xff]  ;;  %p3261_p6 = por %p3260_p5, %p3259_p4 }
  0x4a   : > { %v1037_v45 = vadd.f32 %v1036_v40, %v3673_v35  ;;  %v1138_v33 = vld [vmem:[%s4664_s5 + $0x58] sm:$0xff] }
  0x4b   : > { %717 = vperm.xlu1 %3215, %v695_v31   ;;  %712 = vperm.xlu0 %3214, %v694_v32   ;;  %v1248_v31 = vld [vmem:[%s4665_s6 + $0x48] sm:$0xff]  ;;  %v1247_v32 = vld [vmem:[%s4665_s6 + $0x40] sm:$0xff]  ;;  %v1250_v41 = vld [vmem:[%s4665_s6 + $0x58] sm:$0xff]  ;;  %p3262_p7 = pnand %p3261_p6, %p3255_p3 }
  0x4c   : > { %v1038_v48 = vadd.f32 %v1037_v45, %v3676_v36  ;;  %3009 = vmatpush3.bf16.msra.mxu0 %v577_v34  ;;  %v1137_v34 = vld [vmem:[%s4664_s5 + $0x50] sm:$0xff] }
  0x4d   : > { %3010 = vmatprep.subr.bf16.mxu0 %v578_v42 }
  0x4e   : > { %v1039_v52 = vadd.f32 %v1038_v48, %v3692_v43 }
  0x4f   : > { %1150 = vperm.xlu1 %3215, %v1128_v38   ;;  %1145 = vperm.xlu0 %3214, %v1127_v39  }
  0x50   : > { %v1040_v55 = vadd.f32 %v1039_v52, %v3695_v44  ;;  %3011 = vmatpush3.bf16.msra.mxu0 %v578_v42 }
  0x51   : > { %3012 = vmatprep.subr.bf16.mxu0 %v579_v49 }
  0x52   : > { %v1041_v59 = vadd.f32 %v1040_v55, %v3708_v50 }
  0x53   : > { %1262 = vperm.xlu1 %3215, %v1240_v46   ;;  %1257 = vperm.xlu0 %3214, %v1239_v47  }
  0x54   : > { %v1042_v62 = vadd.f32 %v1041_v59, %v3711_v51  ;;  %3013 = vmatpush3.bf16.msra.mxu0 %v579_v49  ;;  %v1252_v59 = vld [vmem:[%s4665_s6 + $0x68] sm:$0xff] }
  0x55   : > { %3014 = vmatprep.subr.bf16.mxu0 %v580_v56 }
  0x56   : > { %v1043_v2 = vadd.f32 %v1042_v62, %v3724_v57 }
  0x57   : > { %1160 = vperm.xlu1 %3215, %v1130_v53   ;;  %1155 = vperm.xlu0 %3214, %v1129_v54  }
  0x58   : > { %v1044_v5 = vadd.f32 %v1043_v2, %v3727_v58  ;;  %3015 = vmatpush3.bf16.msra.mxu0 %v580_v56 }
  0x59   : > { %3016 = vmatprep.subr.bf16.mxu0 %v581_v63 }
  0x5a   : > { %v1045_v7 = vadd.f32 %v1044_v5, %v3740_v0 }
  0x5b   : > { %1272 = vperm.xlu1 %3215, %v1242_v60   ;;  %1267 = vperm.xlu0 %3214, %v1241_v61  }
  0x5c   : > { %v1046_v10 = vadd.f32 %v1045_v7, %v3743_v1  ;;  %3017 = vmatpush3.bf16.msra.mxu0 %v581_v63 }
  0x5d   : > { %3018 = vmatprep.subr.bf16.mxu0 %v582_v6 }
  0x5e   : > { %v1047_v12 = vrot.slane %v1046_v10, 4 }
  0x5f   : > { %1170 = vperm.xlu1 %3215, %v1132_v3   ;;  %1165 = vperm.xlu0 %3214, %v1131_v4   ;;  %v1142_v3 = vld [vmem:[%s4664_s5 + $0x78] sm:$0xff] }
  0x60   : > { %v1048_v15 = vadd.f32 %v1047_v12, %v1046_v10  ;;  %3019 = vmatpush3.bf16.msra.mxu0 %v582_v6 }
  0x62   : > { %v1049_v16 = vrot.slane %v1048_v15, 2 }
  0x63   : > { %1282 = vperm.xlu1 %3215, %v1244_v8   ;;  %1277 = vperm.xlu0 %3214, %v1243_v9   ;;  %v1254_v9 = vld [vmem:[%s4665_s6 + $0x78] sm:$0xff] }
  0x64   : > { %3021 = vmatmul.mubr.bf16.vlgmr.msra.gmra.mrb[0].mxu0 %v3217_v14  ;;  %v1050_v19 = vadd.f32 %v1049_v16, %v1048_v15  ;;  %v697_v15 = vld [vmem:[%s4663_s4 + $0x18] sm:$0xff] }
  0x66   : > { %v1051_v20 = vrot.slane %v1050_v19, 1 }
  0x67   : > { %1180 = vperm.xlu1 %3215, %v1134_v11   ;;  %1175 = vperm.xlu0 %3214, %v1133_v13  }
  0x68   : > { %v1052_v27 = vadd.f32 %v1051_v20, %v1050_v19  ;;  %v699_v20 = vld [vmem:[%s4663_s4 + $0x28] sm:$0xff] }
  0x6a   : > { %v3784_v30 = vmul.f32 0.0078125, %v1052_v27 }
  0x6b   : > { %1292 = vperm.xlu1 %3215, %v1246_v17   ;;  %1287 = vperm.xlu0 %3214, %v1245_v18  }
  0x6c   : > { %v3800_v37 = vsub.f32 %v3645_v23, %v3784_v30  ;;  %v3804_v38 = vsub.f32 %v3652_v26, %v3784_v30  ;;  %v3808_v39 = vsub.f32 %v3639_v21, %v3784_v30  ;;  %v3812_v40 = vsub.f32 %v3642_v22, %v3784_v30  ;;  %v1249_v23 = vld [vmem:[%s4665_s6 + $0x50] sm:$0xff] }
  0x6d   : > { %v3824_v21 = vsub.f32 %v3657_v28, %v3784_v30  ;;  %v3834_v46 = vsub.f32 %v3660_v29, %v3784_v30  ;;  %v1140_v28 = vld [vmem:[%s4664_s5 + $0x68] sm:$0xff]  ;;  %v3843_v49 = vsub.f32 %v3673_v35, %v3784_v30  ;;  %v1139_v29 = vld [vmem:[%s4664_s5 + $0x60] sm:$0xff]  ;;  %v3852_v54 = vsub.f32 %v3676_v36, %v3784_v30 }
  0x6e   : > { %v1073_v26 = vmul.f32 %v3800_v37, %v3800_v37  ;;  %v1071_v22 = vmul.f32 %v3808_v39, %v3808_v39  ;;  %v1072_v42 = vmul.f32 %v3812_v40, %v3812_v40  ;;  %v1074_v45 = vmul.f32 %v3804_v38, %v3804_v38  ;;  %v1251_v36 = vld [vmem:[%s4665_s6 + $0x60] sm:$0xff] }
  0x6f   : > { %1190 = vperm.xlu1 %3215, %v1136_v24   ;;  %1185 = vperm.xlu0 %3214, %v1135_v25   ;;  %v1075_v48 = vmul.f32 %v3824_v21, %v3824_v21  ;;  %v1076_v53 = vmul.f32 %v3834_v46, %v3834_v46  ;;  %v1077_v56 = vmul.f32 %v3843_v49, %v3843_v49  ;;  %v698_v25 = vld [vmem:[%s4663_s4 + $0x20] sm:$0xff] }
  0x70   : > { %v1087_v47 = vadd.f32 %v1072_v42, %v1071_v22  ;;  %v3858_v35 = vsub.f32 %v3692_v43, %v3784_v30  ;;  %v1078_v61 = vmul.f32 %v3852_v54, %v3852_v54  ;;  %v3870_v62 = vsub.f32 %v3695_v44, %v3784_v30  ;;  %v1141_v44 = vld [vmem:[%s4664_s5 + $0x70] sm:$0xff]  ;;  %v705_v42 = vld [vmem:[%s4663_s4 + $0x58] sm:$0xff] }
  0x71   : > { %v3876_v2 = vsub.f32 %v3708_v50, %v3784_v30  ;;  %v3888_v6 = vsub.f32 %v3711_v51, %v3784_v30  ;;  %v3894_v8 = vsub.f32 %v3724_v57, %v3784_v30  ;;  %v1253_v51 = vld [vmem:[%s4665_s6 + $0x70] sm:$0xff]  ;;  %v3906_v12 = vsub.f32 %v3727_v58, %v3784_v30 }
  0x72   : > { %v1088_v52 = vadd.f32 %v1087_v47, %v1073_v26  ;;  %v1079_v43 = vmul.f32 %v3858_v35, %v3858_v35  ;;  %v1080_v5 = vmul.f32 %v3870_v62, %v3870_v62  ;;  %v3912_v14 = vsub.f32 %v3740_v0, %v3784_v30  ;;  %v696_v58 = vld [vmem:[%s4663_s4 + $0x10] sm:$0xff]  ;;  %v702_v26 = vld [vmem:[%s4663_s4 + $0x40] sm:$0xff] }
  0x73   : > { %1302 = vperm.xlu1 %3215, %v1248_v31   ;;  %1297 = vperm.xlu0 %3214, %v1247_v32   ;;  %v1081_v50 = vmul.f32 %v3876_v2, %v3876_v2  ;;  %v1082_v11 = vmul.f32 %v3888_v6, %v3888_v6  ;;  %v1083_v57 = vmul.f32 %v3894_v8, %v3894_v8  ;;  %v701_v31 = vld [vmem:[%s4663_s4 + $0x38] sm:$0xff]  ;;  %v704_v47 = vld [vmem:[%s4663_s4 + $0x50] sm:$0xff] }
  0x74   : > { %v1089_v55 = vadd.f32 %v1088_v52, %v1074_v45  ;;  %v1084_v17 = vmul.f32 %v3906_v12, %v3906_v12  ;;  %v3924_v18 = vsub.f32 %v3743_v1, %v3784_v30  ;;  %v1085_v0 = vmul.f32 %v3912_v14, %v3912_v14  ;;  %v3218_v1 = vld [vmem:[%s4666_s7] sm:$0xff]  }
  0x75   : > { %3060 = vmatprep.mubr.bf16.mxu0 %v3218_v1  ;;  %v3226_v1 = vld [vmem:[%s4702_s3] sm:$0xff]  }
  0x76   : > { %v1090_v60 = vadd.f32 %v1089_v55, %v1075_v48  ;;  %v1086_v27 = vmul.f32 %v3924_v18, %v3924_v18  ;;  %v707_v48 = vld [vmem:[%s4663_s4 + $0x68] sm:$0xff]  ;;  %v709_v55 = vld [vmem:[%s4663_s4 + $0x78] sm:$0xff]  ;;  %3028 = vmatprep.mubr.msk.bf16.mxu1 %vm830_vm0, %v3226_v1 }
  0x77   : > { %1200 = vperm.xlu1 %3215, %v1138_v33   ;;  %1195 = vperm.xlu0 %3214, %v1137_v34   ;;  %v700_v33 = vld [vmem:[%s4663_s4 + $0x30] sm:$0xff] }
  0x78   : > { %v1091_v63 = vadd.f32 %v1090_v60, %v1076_v53 }
  0x7a   : > { %v1092_v4 = vadd.f32 %v1091_v63, %v1077_v56  ;;  %v1410_v63 = vld [vmem:[%s4667_s8 + $0x18] sm:$0xff] }
  0x7b   : > { %1312 = vperm.xlu1 %3215, %v1250_v41   ;;  %1307 = vperm.xlu0 %3214, %v1249_v23   ;;  %v703_v41 = vld [vmem:[%s4663_s4 + $0x48] sm:$0xff] }
  0x7c   : > { %v1093_v7 = vadd.f32 %v1092_v4, %v1078_v61  ;;  %v1407_v61 = vld [vmem:[%s4667_s8] sm:$0xff] }
  0x7d   : > { %v1411_v4 = vld [vmem:[%s4667_s8 + $0x20] sm:$0xff] }
  0x7e   : > { %v1094_v10 = vadd.f32 %v1093_v7, %v1079_v43  ;;  %v1409_v43 = vld [vmem:[%s4667_s8 + $0x10] sm:$0xff] }
  0x7f   : > { %1210 = vperm.xlu1 %3215, %v1140_v28   ;;  %1205 = vperm.xlu0 %3214, %v1139_v29   ;;  %v706_v29 = vld [vmem:[%s4663_s4 + $0x60] sm:$0xff] }
  0x80   : > { %v1095_v13 = vadd.f32 %v1094_v10, %v1080_v5  ;;  %v1414_v10 = vld [vmem:[%s4667_s8 + $0x38] sm:$0xff] }
  0x82   : > { %v1096_v16 = vadd.f32 %v1095_v13, %v1081_v50  ;;  %v1417_v13 = vld [vmem:[%s4667_s8 + $0x50] sm:$0xff] }
  0x83   : > { %1322 = vperm.xlu1 %3215, %v1252_v59   ;;  %1317 = vperm.xlu0 %3214, %v1251_v36   ;;  %v708_v59 = vld [vmem:[%s4663_s4 + $0x70] sm:$0xff]  ;;  %v1408_v36 = vld [vmem:[%s4667_s8 + $0x8] sm:$0xff] }
  0x84   : > { %v1097_v19 = vadd.f32 %v1096_v16, %v1082_v11 }
  0x86   : > { %v1098_v24 = vadd.f32 %v1097_v19, %v1083_v57  ;;  %v1420_v57 = vld [vmem:[%s4667_s8 + $0x68] sm:$0xff] }
  0x87   : > { %1220 = vperm.xlu1 %3215, %v1142_v3   ;;  %1215 = vperm.xlu0 %3214, %v1141_v44   ;;  %v1412_v3 = vld [vmem:[%s4667_s8 + $0x28] sm:$0xff] }
  0x88   : > { %v1099_v30 = vadd.f32 %v1098_v24, %v1084_v17  ;;  %v1421_v17 = vld [vmem:[%s4667_s8 + $0x70] sm:$0xff] }
  0x8a   : > { %v1100_v32 = vadd.f32 %v1099_v30, %v1085_v0  ;;  %v1424_v0 = vld [vmem:[%s4667_s8 + $0x88] sm:$0xff]  ;;  %v1425_v30 = vld [vmem:[%s4667_s8 + $0x90] sm:$0xff] }
  0x8b   : > { %1332 = vperm.xlu1 %3215, %v1254_v9   ;;  %1327 = vperm.xlu0 %3214, %v1253_v51  }
  0x8c   : > { %v1101_v34 = vadd.f32 %v1100_v32, %v1086_v27  ;;  %v1426_v27 = vld [vmem:[%s4667_s8 + $0x98] sm:$0xff] }
  0x8e   : > { %v1102_v23 = vrot.slane %v1101_v34, 4 }
  0x8f   : > { %727 = vperm.xlu1 %3215, %v697_v15   ;;  %722 = vperm.xlu0 %3214, %v696_v58   ;;  %v1422_v58 = vld [vmem:[%s4667_s8 + $0x78] sm:$0xff] }
  0x90   : > { %v1103_v22 = vadd.f32 %v1102_v23, %v1101_v34  ;;  %v1427_v23 = vld [vmem:[%s4667_s8 + $0xa0] sm:$0xff] }
  0x92   : > { %v1104_v45 = vrot.slane %v1103_v22, 2 }
  0x93   : > { %737 = vperm.xlu1 %3215, %v699_v20   ;;  %732 = vperm.xlu0 %3214, %v698_v25   ;;  %v1423_v20 = vld [vmem:[%s4667_s8 + $0x80] sm:$0xff] }
  0x94   : > { %v1105_v28 = vadd.f32 %v1104_v45, %v1103_v22 }
  0x96   : > { %v1106_v52 = vrot.slane %v1105_v28, 1 }
  0x97   : > { %747 = vperm.xlu1 %3215, %v701_v31   ;;  %742 = vperm.xlu0 %3214, %v700_v33  }
  0x98   : > { %v1107_v53 = vadd.f32 %v1106_v52, %v1105_v28 }
  0x9a   : > { %v1108_v56 = vmul.f32 0.0078125, %v1107_v53 }
  0x9b   : > { %757 = vperm.xlu1 %3215, %v703_v41   ;;  %752 = vperm.xlu0 %3214, %v702_v26   ;;  %v1428_v41 = vld [vmem:[%s4667_s8 + $0xa8] sm:$0xff] }
  0x9c   : > { %v1109_v60 = vadd.f32 1e-05, %v1108_v56  ;;  %v1432_v56 = vld [vmem:[%s4667_s8 + $0xc8] sm:$0xff] }
  0x9e   : > { %3250 = vrsqrt.f32 %v1109_v60 }
  0x9f   : > { %767 = vperm.xlu1 %3215, %v705_v42   ;;  %762 = vperm.xlu0 %3214, %v704_v47   ;;  %v1430_v47 = vld [vmem:[%s4667_s8 + $0xb8] sm:$0xff] }
  0xa3   : > { %777 = vperm.xlu1 %3215, %v707_v48   ;;  %772 = vperm.xlu0 %3214, %v706_v29   ;;  %v1429_v48 = vld [vmem:[%s4667_s8 + $0xb0] sm:$0xff] }
  0xa7   : > { %787 = vperm.xlu1 %3215, %v709_v55   ;;  %782 = vperm.xlu0 %3214, %v708_v59   ;;  %v1431_v59 = vld [vmem:[%s4667_s8 + $0xc0] sm:$0xff] }
  0xa8   : > { %v3987_v44 = vpop.eup %3250 }
  0xa9   : > { %v1112_v5 = vmul.f32 %v3987_v44, %v3812_v40  ;;  %v1111_v7 = vmul.f32 %v3987_v44, %v3808_v39  ;;  %v3995_v50 = vmul.f32 %v3987_v44, %v3804_v38  ;;  %v3999_v9 = vmul.f32 %v3987_v44, %v3800_v37  ;;  %v1413_v38 = vld [vmem:[%s4667_s8 + $0x30] sm:$0xff] }
  0xaa   : > { %v4006_v51 = vmul.f32 %v3987_v44, %v3852_v54  ;;  %v4010_v39 = vmul.f32 %v3987_v44, %v3843_v49  ;;  %v4017_v37 = vmul.f32 %v3987_v44, %v3888_v6  ;;  %v4021_v40 = vmul.f32 %v3987_v44, %v3876_v2  ;;  %v1416_v2 = vld [vmem:[%s4667_s8 + $0x48] sm:$0xff] }
  0xab   : > { %1462 = vperm.xlu1 %3215, %v1408_v36   ;;  %1457 = vperm.xlu0 %3214, %v1407_v61   ;;  %v4025_v54 = vmul.f32 %v3987_v44, %v3906_v12  ;;  %v4029_v49 = vmul.f32 %v3987_v44, %v3894_v8  ;;  %v4033_v11 = vmul.f32 %v3987_v44, %v3924_v18  ;;  %v1415_v12 = vld [vmem:[%s4667_s8 + $0x40] sm:$0xff]  ;;  %v1418_v8 = vld [vmem:[%s4667_s8 + $0x58] sm:$0xff] }
  0xac   : > { %v4037_v6 = vmul.f32 %v3987_v44, %v3912_v14  ;;  %v1419_v14 = vld [vmem:[%s4667_s8 + $0x60] sm:$0xff] }
  0xaf   : > { %1472 = vperm.xlu1 %3215, %v1410_v63   ;;  %1467 = vperm.xlu0 %3214, %v1409_v43   ;;  %v1116_v43 = vmul.f32 %v3987_v44, %v3834_v46  ;;  %v1435_v46 = vld [vmem:[%s4667_s8 + $0xe0] sm:$0xff] }
  0xb3   : > { %1482 = vperm.xlu1 %3215, %v1412_v3   ;;  %1477 = vperm.xlu0 %3214, %v1411_v4   ;;  %v1115_v3 = vmul.f32 %v3987_v44, %v3824_v21  ;;  %v1434_v4 = vld [vmem:[%s4667_s8 + $0xd8] sm:$0xff]  ;;  %v1436_v21 = vld [vmem:[%s4667_s8 + $0xe8] sm:$0xff] }
  0xb7   : > { %1492 = vperm.xlu1 %3215, %v1414_v10   ;;  %1487 = vperm.xlu0 %3214, %v1413_v38  }
  0xbb   : > { %1502 = vperm.xlu1 %3215, %v1416_v2   ;;  %1497 = vperm.xlu0 %3214, %v1415_v12  }
  0xbf   : > { %1512 = vperm.xlu1 %3215, %v1418_v8   ;;  %1507 = vperm.xlu0 %3214, %v1417_v13  }
  0xc2   : > { %v4057_v15 = vpop.permute.xlu1 %603  ;;  %v4059_v16 = vpop.permute.xlu0 %593 }
  0xc3   : > { %1522 = vperm.xlu1 %3215, %v1420_v57   ;;  %1517 = vperm.xlu0 %3214, %v1419_v14   ;;  %v1438_v57 = vld [vmem:[%s4667_s8 + $0xf8] sm:$0xff] }
  0xc6   : > { %v4067_v18 = vpop.permute.xlu1 %608  ;;  %v4069_v19 = vpop.permute.xlu0 %598 }
  0xc7   : > { %1532 = vperm.xlu1 %3215, %v1422_v58   ;;  %1527 = vperm.xlu0 %3214, %v1421_v17   ;;  %v1437_v58 = vld [vmem:[%s4667_s8 + $0xf0] sm:$0xff] }
  0xca   : > { %v4077_v24 = vpop.permute.xlu1 %717  ;;  %v4079_v25 = vpop.permute.xlu0 %712 }
  0xcb   : > { %1542 = vperm.xlu1 %3215, %v1424_v0   ;;  %1537 = vperm.xlu0 %3214, %v1423_v20  }
  0xce   : > { %v1151_v31 = vpop.permute.xlu1 %1150  ;;  %v1146_v32 = vpop.permute.xlu0 %1145 }
  0xcf   : > { %v1224_v33 = vmul.f32 %v1151_v31, %v1112_v5  ;;  %v1223_v34 = vmul.f32 %v1146_v32, %v1111_v7  ;;  %1552 = vperm.xlu1 %3215, %v1426_v27   ;;  %1547 = vperm.xlu0 %3214, %v1425_v30   ;;  %v1433_v7 = vld [vmem:[%s4667_s8 + $0xd0] sm:$0xff]  ;;  %v1440_v27 = vld [vmem:[%s4667_s8 + $0x108] sm:$0xff]  ;;  %v1439_v30 = vld [vmem:[%s4667_s8 + $0x100] sm:$0xff] }
  0xd2   : > { %v1263_v26 = vpop.permute.xlu1 %1262  ;;  %v1258_v22 = vpop.permute.xlu0 %1257 }
  0xd3   : > { %v1336_v42 = vadd.f32 %v1263_v26, %v1224_v33  ;;  %v1335_v45 = vadd.f32 %v1258_v22, %v1223_v34  ;;  %1562 = vperm.xlu1 %3215, %v1428_v41   ;;  %1557 = vperm.xlu0 %3214, %v1427_v23   ;;  %v1119_v34 = vmul.f32 %v3987_v44, %v3858_v35  ;;  %v1442_v41 = vld [vmem:[%s4667_s8 + $0x118] sm:$0xff]  ;;  %v1441_v26 = vld [vmem:[%s4667_s8 + $0x110] sm:$0xff]  ;;  %v1444_v35 = vld [vmem:[%s4667_s8 + $0x128] sm:$0xff] }
  0xd5   : > { %v4100_v28 = vpack.c.bf16 %v1336_v42, %v1335_v45 }
  0xd6   : > { %v1161_v52 = vpop.permute.xlu1 %1160  ;;  %v1156_v29 = vpop.permute.xlu0 %1155 }
  0xd7   : > { %v1226_v53 = vmul.f32 %v1161_v52, %v3995_v50  ;;  %v1225_v55 = vmul.f32 %v1156_v29, %v3999_v9  ;;  %1572 = vperm.xlu1 %3215, %v1430_v47   ;;  %3044 = vmatprep.subr.bf16.mxu0 %v4100_v28 }
  0xd8   : > { %1567 = vperm.xlu0 %3214, %v1429_v48   ;;  %3045 = vmatpush3.bf16.msra.mxu0 %v4100_v28 }
  0xda   : > { %v1273_v60 = vpop.permute.xlu1 %1272  ;;  %v1268_v36 = vpop.permute.xlu0 %1267 }
  0xdb   : > { %v1338_v61 = vadd.f32 %v1273_v60, %v1226_v53  ;;  %v1337_v63 = vadd.f32 %v1268_v36, %v1225_v55  ;;  %1582 = vperm.xlu1 %3215, %v1432_v56   ;;  %v1446_v53 = vld [vmem:[%s4667_s8 + $0x138] sm:$0xff]  ;;  %v1445_v55 = vld [vmem:[%s4667_s8 + $0x130] sm:$0xff] }
  0xdc   : > { %1577 = vperm.xlu0 %3214, %v1431_v59  }
  0xdd   : > { %v4122_v5 = vpack.c.bf16 %v1338_v61, %v1337_v63  ;;  %v1448_v63 = vld [vmem:[%s4667_s8 + $0x148] sm:$0xff] }
  0xde   : > { %v1171_v50 = vpop.permute.xlu1 %1170  ;;  %v1166_v9 = vpop.permute.xlu0 %1165 }
  0xdf   : > { %v1228_v10 = vmul.f32 %v1171_v50, %v1116_v43  ;;  %v1227_v38 = vmul.f32 %v1166_v9, %v1115_v3  ;;  %1592 = vperm.xlu1 %3215, %v1434_v4   ;;  %3046 = vmatprep.subr.bf16.mxu0 %v4122_v5  ;;  %v1447_v43 = vld [vmem:[%s4667_s8 + $0x140] sm:$0xff]  ;;  %v1449_v50 = vld [vmem:[%s4667_s8 + $0x150] sm:$0xff] }
  0xe0   : > { %1587 = vperm.xlu0 %3214, %v1433_v7   ;;  %3047 = vmatpush3.bf16.msra.mxu0 %v4122_v5 }
  0xe2   : > { %v1283_v2 = vpop.permute.xlu1 %1282  ;;  %v1278_v12 = vpop.permute.xlu0 %1277 }
  0xe3   : > { %v1340_v8 = vadd.f32 %v1283_v2, %v1228_v10  ;;  %v1339_v13 = vadd.f32 %v1278_v12, %v1227_v38  ;;  %1602 = vperm.xlu1 %3215, %v1436_v21   ;;  %v1452_v2 = vld [vmem:[%s4667_s8 + $0x168] sm:$0xff]  ;;  %v1451_v12 = vld [vmem:[%s4667_s8 + $0x160] sm:$0xff] }
  0xe4   : > { %1597 = vperm.xlu0 %3214, %v1435_v46  }
  0xe5   : > { %v4138_v14 = vpack.c.bf16 %v1340_v8, %v1339_v13 }
  0xe6   : > { %v1181_v17 = vpop.permute.xlu1 %1180  ;;  %v1176_v0 = vpop.permute.xlu0 %1175 }
  0xe7   : > { %v1230_v20 = vmul.f32 %v1181_v17, %v4006_v51  ;;  %v1229_v1 = vmul.f32 %v1176_v0, %v4010_v39  ;;  %1612 = vperm.xlu1 %3215, %v1438_v57   ;;  %3048 = vmatprep.subr.bf16.mxu0 %v4138_v14  ;;  %v1120_v39 = vmul.f32 %v3987_v44, %v3870_v62  ;;  %v1443_v44 = vld [vmem:[%s4667_s8 + $0x120] sm:$0xff] }
  0xe8   : > { %1607 = vperm.xlu0 %3214, %v1437_v58   ;;  %3049 = vmatpush3.bf16.msra.mxu0 %v4138_v14  ;;  %v1453_v58 = vld [vmem:[%s4667_s8 + $0x170] sm:$0xff] }
  0xea   : > { %v1293_v31 = vpop.permute.xlu1 %1292  ;;  %v1288_v32 = vpop.permute.xlu0 %1287 }
  0xeb   : > { %v1342_v33 = vadd.f32 %v1293_v31, %v1230_v20  ;;  %v1341_v51 = vadd.f32 %v1288_v32, %v1229_v1  ;;  %1622 = vperm.xlu1 %3215, %v1440_v27  }
  0xec   : > { %1617 = vperm.xlu0 %3214, %v1439_v30  }
  0xed   : > { %v4160_v23 = vpack.c.bf16 %v1342_v33, %v1341_v51 }
  0xee   : > { %v1191_v22 = vpop.permute.xlu1 %1190  ;;  %v1186_v42 = vpop.permute.xlu0 %1185 }
  0xef   : > { %v1232_v45 = vmul.f32 %v1191_v22, %v1120_v39  ;;  %1632 = vperm.xlu1 %3215, %v1442_v41   ;;  %3050 = vmatprep.subr.bf16.mxu0 %v4160_v23  ;;  %v1231_v62 = vmul.f32 %v1186_v42, %v1119_v34  ;;  %v3221_v39 = vld [vmem:[%s4666_s7 + $0x18] sm:$0xff]   ;;  %v3222_v34 = vld [vmem:[%s4666_s7 + $0x20] sm:$0xff]   ;;  %v3223_v41 = vld [vmem:[%s4666_s7 + $0x28] sm:$0xff]  }
  0xf0   : > { %1627 = vperm.xlu0 %3214, %v1441_v26   ;;  %3051 = vmatpush3.bf16.msra.mxu0 %v4160_v23  ;;  %v3224_v26 = vld [vmem:[%s4666_s7 + $0x30] sm:$0xff]   ;;  %v3225_v22 = vld [vmem:[%s4666_s7 + $0x38] sm:$0xff]  }
  0xf2   : > { %v1303_v47 = vpop.permute.xlu1 %1302  ;;  %v1298_v52 = vpop.permute.xlu0 %1297 }
  0xf3   : > { %v1344_v48 = vadd.f32 %v1303_v47, %v1232_v45  ;;  %1642 = vperm.xlu1 %3215, %v1444_v35   ;;  %v1343_v29 = vadd.f32 %v1298_v52, %v1231_v62 }
  0xf4   : > { %1637 = vperm.xlu0 %3214, %v1443_v44  }
  0xf5   : > { %v4179_v56 = vpack.c.bf16 %v1344_v48, %v1343_v29 }
  0xf6   : > { %v1201_v59 = vpop.permute.xlu1 %1200  ;;  %v1196_v36 = vpop.permute.xlu0 %1195 }
  0xf7   : > { %v1234_v60 = vmul.f32 %v1201_v59, %v4017_v37  ;;  %1652 = vperm.xlu1 %3215, %v1446_v53   ;;  %v1233_v61 = vmul.f32 %v1196_v36, %v4021_v40  ;;  %3052 = vmatprep.subr.bf16.mxu0 %v4179_v56  ;;  %v1450_v40 = vld [vmem:[%s4667_s8 + $0x158] sm:$0xff] }
  0xf8   : > { %1647 = vperm.xlu0 %3214, %v1445_v55   ;;  %3053 = vmatpush3.bf16.msra.mxu0 %v4179_v56 }
  0xfa   : > { %v1313_v3 = vpop.permute.xlu1 %1312  ;;  %v1308_v37 = vpop.permute.xlu0 %1307 }
  0xfb   : > { %v1346_v4 = vadd.f32 %v1313_v3, %v1234_v60  ;;  %1662 = vperm.xlu1 %3215, %v1448_v63   ;;  %v1345_v7 = vadd.f32 %v1308_v37, %v1233_v61  ;;  %v3236_v61 = vld [vmem:[%s4666_s7 + $0x50] sm:$0xff]   ;;  %v3237_v63 = vld [vmem:[%s4666_s7 + $0x58] sm:$0xff]   ;;  %v3239_v3 = vld [vmem:[%s4666_s7 + $0x68] sm:$0xff]  }
  0xfc   : > { %1657 = vperm.xlu0 %3214, %v1447_v43   ;;  %v3238_v43 = vld [vmem:[%s4666_s7 + $0x60] sm:$0xff]   ;;  %v3241_v37 = vld [vmem:[%s4666_s7 + $0x78] sm:$0xff]  }
  0xfd   : > { %v4197_v9 = vpack.c.bf16 %v1346_v4, %v1345_v7  ;;  %v3240_v4 = vld [vmem:[%s4666_s7 + $0x70] sm:$0xff]   ;;  %v3242_v7 = vld [vmem:[%s4666_s7 + $0x80] sm:$0xff]  }
  0xfe   : > { %v1211_v10 = vpop.permute.xlu1 %1210  ;;  %v1206_v21 = vpop.permute.xlu0 %1205 }
  0xff   : > { %v1236_v38 = vmul.f32 %v1211_v10, %v4025_v54  ;;  %1672 = vperm.xlu1 %3215, %v1450_v40   ;;  %v1235_v46 = vmul.f32 %v1206_v21, %v4029_v49  ;;  %3054 = vmatprep.subr.bf16.mxu0 %v4197_v9  ;;  %v1454_v49 = vld [vmem:[%s4667_s8 + $0x178] sm:$0xff]  ;;  %v3243_v40 = vld [vmem:[%s4666_s7 + $0x88] sm:$0xff]   ;;  %v3246_v10 = vld [vmem:[%s4666_s7 + $0xa0] sm:$0xff]  }
 0x100   : > { %1667 = vperm.xlu0 %3214, %v1449_v50   ;;  %3055 = vmatpush3.bf16.msra.mxu0 %v4197_v9  ;;  %v3244_v50 = vld [vmem:[%s4666_s7 + $0x90] sm:$0xff]  }
 0x101   : > { %v3248_v21 = vld [vmem:[%s4666_s7 + $0xb0] sm:$0xff]  }
 0x102   : > { %v1323_v8 = vpop.permute.xlu1 %1322  ;;  %v1318_v54 = vpop.permute.xlu0 %1317 }
 0x103   : > { %v1348_v13 = vadd.f32 %v1323_v8, %v1236_v38  ;;  %1682 = vperm.xlu1 %3215, %v1452_v2   ;;  %v1347_v57 = vadd.f32 %v1318_v54, %v1235_v46  ;;  %v3247_v38 = vld [vmem:[%s4666_s7 + $0xa8] sm:$0xff]   ;;  %v3249_v46 = vld [vmem:[%s4666_s7 + $0xb8] sm:$0xff]  }
 0x104   : > { %1677 = vperm.xlu0 %3214, %v1451_v12  }
 0x105   : > { %v4215_v17 = vpack.c.bf16 %v1348_v13, %v1347_v57 }
 0x106   : > { %v1221_v0 = vpop.permute.xlu1 %1220  ;;  %v1216_v1 = vpop.permute.xlu0 %1215 }
 0x107   : > { %v1238_v20 = vmul.f32 %v1221_v0, %v4033_v11  ;;  %1692 = vperm.xlu1 %3215, %v1454_v49   ;;  %v1237_v27 = vmul.f32 %v1216_v1, %v4037_v6  ;;  %3056 = vmatprep.subr.bf16.mxu0 %v4215_v17  ;;  %v3219_v11 = vld [vmem:[%s4666_s7 + $0x8] sm:$0xff]   ;;  %v3220_v6 = vld [vmem:[%s4666_s7 + $0x10] sm:$0xff]  }
 0x108   : > { %1687 = vperm.xlu0 %3214, %v1453_v58   ;;  %3057 = vmatpush3.bf16.msra.mxu0 %v4215_v17 }
 0x10a   : > { %v1333_v30 = vpop.permute.xlu1 %1332  ;;  %v1328_v32 = vpop.permute.xlu0 %1327 }
 0x10b   : > { %v1350_v31 = vadd.f32 %v1333_v30, %v1238_v20  ;;  %v1349_v33 = vadd.f32 %v1328_v32, %v1237_v27 }
 0x10d   : > { %v4221_v51 = vpack.c.bf16 %v1350_v31, %v1349_v33 }
 0x10e   : > { %v4342_v2 = vpop.permute.xlu1 %727  ;;  %v4344_v12 = vpop.permute.xlu0 %722 }
 0x10f   : > { %3058 = vmatprep.subr.bf16.mxu0 %v4221_v51 }
 0x110   : > { %3059 = vmatpush3.bf16.msra.mxu0 %v4221_v51 }
 0x112   : > { %v4346_v8 = vpop.permute.xlu1 %737  ;;  %v4348_v13 = vpop.permute.xlu0 %732 }
 0x113   : > { %3061 = vmatmul.mubr.bf16.vlgmr.msra.gmra.mrb[4].mxu0 %v3219_v11 }
 0x114   : > { %3064 = vmatprep.mubr.bf16.mxu0 %v3220_v6 }
 0x116   : > { %v4350_v54 = vpop.permute.xlu1 %747  ;;  %v4352_v57 = vpop.permute.xlu0 %742 }
 0x11a   : > { %v4354_v49 = vpop.permute.xlu1 %757  ;;  %v4356_v58 = vpop.permute.xlu0 %752 }
 0x11b   : > { %3065 = vmatmul.mubr.bf16.gmra.mrb[8].mxu0 %v3221_v39 }
 0x11c   : > { %3068 = vmatprep.mubr.bf16.mxu0 %v3222_v34 }
 0x11e   : > { %v4360_v0 = vpop.permute.xlu0 %762 }
 0x122   : > { %v4364_v1 = vpop.permute.xlu0 %772 }
 0x123   : > { %3069 = vmatmul.mubr.bf16.gmra.mrb[12].mxu0 %v3223_v41 }
 0x124   : > { %3072 = vmatprep.mubr.bf16.mxu0 %v3224_v26 }
 0x126   : > { %v4368_v30 = vpop.permute.xlu0 %782 }
 0x12a   : > { %v1458_v32 = vpop.permute.xlu0 %1457 }
 0x12b   : > { %3073 = vmatmul.mubr.bf16.gmra.mrb[16].mxu0 %v3225_v22 }
 0x137   : > { %v3022_v42 = vpop.f32.mrb[0].mxu0 }
 0x138   : > { %v666_v45 = vadd.f32 %v3022_v42, %v4057_v15  ;;  %v657_v62 = vpop.f32.mrb[1].mxu0  ;;  %v3227_v15 = vld [vmem:[%s4702_s3 + $0x8] sm:$0xff]  }
 0x139   : > { %v658_v35 = vadd.f32 %v657_v62, %v4059_v16  ;;  %v3023_v44 = vpop.f32.mrb[2].mxu0  ;;  %v3228_v16 = vld [vmem:[%s4702_s3 + $0x10] sm:$0xff]  }
 0x13a   : > { %v669_v47 = vadd.f32 %v3023_v44, %v4067_v18  ;;  %v660_v48 = vpop.f32.mrb[3].mxu0  ;;  %v674_v29 = vmax.f32 %v666_v45, 0.0  ;;  %v3229_v18 = vld [vmem:[%s4702_s3 + $0x18] sm:$0xff]  }
 0x13b   : > { %v661_v52 = vadd.f32 %v660_v48, %v4069_v19  ;;  %v672_v55 = vmax.f32 %v658_v35, 0.0  ;;  %v3230_v19 = vld [vmem:[%s4702_s3 + $0x20] sm:$0xff]  }
 0x13c   : > { %v675_v53 = vmax.f32 %v669_v47, 0.0 }
 0x13d   : > { %v673_v59 = vmax.f32 %v661_v52, 0.0 }
 0x13e   : > { %v693_v60 = vpack.c.bf16 %v675_v53, %v674_v29 }
 0x13f   : > { %v692_v36 = vpack.c.bf16 %v673_v59, %v672_v55 }
 0x141   : > { %3024 = vmatprep.subr.bf16.mxu1 %v692_v36 }
 0x142   : > { %3025 = vmatpush3.bf16.msra.mxu1 %v692_v36 }
 0x143   : > { %3026 = vmatprep.subr.bf16.mxu1 %v693_v60 }
 0x146   : > { %3027 = vmatpush3.bf16.msra.mxu1 %v693_v60 }
 0x147   : > { %3108 = vmatprep.subr.bf16.mxu1 %v4100_v28 }
 0x149   : > { %3029 = vmatmul.mubr.msk.bf16.vlgmr.msra.gmra.mrb[0].mxu1 %vm830_vm0, %v3227_v15 }
 0x14a   : > { %3116 = vmatpush3.bf16.msra.mxu1 %v4100_v28  ;;  %3032 = vmatprep.mubr.msk.bf16.mxu1 %vm830_vm0, %v3228_v16  ;;  %v3231_v28 = vld [vmem:[%s4702_s3 + $0x28] sm:$0xff]  }
 0x14b   : > { %3109 = vmatprep.subr.bf16.mxu1 %v4122_v5 }
 0x14e   : > { %3117 = vmatpush3.bf16.msra.mxu1 %v4122_v5  ;;  %v3232_v5 = vld [vmem:[%s4702_s3 + $0x30] sm:$0xff]  }
 0x14f   : > { %3110 = vmatprep.subr.bf16.mxu1 %v4138_v14 }
 0x151   : > { %3033 = vmatmul.mubr.msk.bf16.gmra.mrb[4].mxu1 %vm830_vm0, %v3229_v18 }
 0x152   : > { %3118 = vmatpush3.bf16.msra.mxu1 %v4138_v14  ;;  %3036 = vmatprep.mubr.msk.bf16.mxu1 %vm830_vm0, %v3230_v19  ;;  %v3233_v14 = vld [vmem:[%s4702_s3 + $0x38] sm:$0xff]  }
 0x153   : > { %3111 = vmatprep.subr.bf16.mxu1 %v4160_v23 }
 0x156   : > { %3119 = vmatpush3.bf16.msra.mxu1 %v4160_v23  ;;  %v3234_v23 = vld [vmem:[%s4666_s7 + $0x40] sm:$0xff]  }
 0x157   : > { %3112 = vmatprep.subr.bf16.mxu1 %v4179_v56 }
 0x159   : > { %3037 = vmatmul.mubr.msk.bf16.gmra.mrb[8].mxu1 %vm830_vm0, %v3231_v28 }
 0x15a   : > { %3120 = vmatpush3.bf16.msra.mxu1 %v4179_v56  ;;  %3040 = vmatprep.mubr.msk.bf16.mxu1 %vm830_vm0, %v3232_v5  ;;  %v3235_v56 = vld [vmem:[%s4666_s7 + $0x48] sm:$0xff]  }
 0x15b   : > { %3113 = vmatprep.subr.bf16.mxu1 %v4197_v9 }
 0x15e   : > { %3121 = vmatpush3.bf16.msra.mxu1 %v4197_v9  ;;  %v3245_v9 = vld [vmem:[%s4666_s7 + $0x98] sm:$0xff]  }
 0x15f   : > { %3114 = vmatprep.subr.bf16.mxu1 %v4215_v17 }
 0x161   : > { %3041 = vmatmul.mubr.msk.bf16.gmra.mrb[12].mxu1 %vm830_vm0, %v3233_v14 }
 0x162   : > { %3122 = vmatpush3.bf16.msra.mxu1 %v4215_v17  ;;  %3076 = vmatprep.mubr.bf16.mxu1 %v3234_v23  ;;  %v4358_v17 = vpop.permute.xlu1 %767 }
 0x163   : > { %3115 = vmatprep.subr.bf16.mxu1 %v4221_v51 }
 0x166   : > { %3123 = vmatpush3.bf16.msra.mxu1 %v4221_v51  ;;  %v4362_v20 = vpop.permute.xlu1 %777  ;;  %v1468_v51 = vpop.permute.xlu0 %1467 }
 0x169   : > { %3077 = vmatmul.mubr.bf16.vlgmr.msra.gmra.mrb[16].mxu1 %v3235_v56 }
 0x16a   : > { %3080 = vmatprep.mubr.bf16.mxu1 %v3236_v61  ;;  %v4366_v27 = vpop.permute.xlu1 %787  ;;  %v1478_v6 = vpop.permute.xlu0 %1477 }
 0x16e   : > { %v1463_v31 = vpop.permute.xlu1 %1462  ;;  %v1488_v26 = vpop.permute.xlu0 %1487 }
 0x171   : > { %3081 = vmatmul.mubr.bf16.gmra.mrb[20].mxu1 %v3237_v63 }
 0x172   : > { %3084 = vmatprep.mubr.bf16.mxu1 %v3238_v43  ;;  %v1473_v33 = vpop.permute.xlu1 %1472  ;;  %v1498_v29 = vpop.permute.xlu0 %1497 }
 0x176   : > { %v1483_v11 = vpop.permute.xlu1 %1482  ;;  %v1508_v5 = vpop.permute.xlu0 %1507 }
 0x179   : > { %3085 = vmatmul.mubr.bf16.gmra.mrb[24].mxu1 %v3239_v3 }
 0x17a   : > { %3088 = vmatprep.mubr.bf16.mxu1 %v3240_v4  ;;  %v1493_v34 = vpop.permute.xlu1 %1492 }
 0x17e   : > { %v1503_v52 = vpop.permute.xlu1 %1502 }
 0x181   : > { %3089 = vmatmul.mubr.bf16.gmra.mrb[28].mxu1 %v3241_v37  ;;  %v1518_v37 = vpop.permute.xlu0 %1517 }
 0x182   : > { %3092 = vmatprep.mubr.bf16.mxu1 %v3242_v7  ;;  %v1513_v19 = vpop.permute.xlu1 %1512 }
 0x186   : > { %v1523_v63 = vpop.permute.xlu1 %1522 }
 0x189   : > { %3093 = vmatmul.mubr.bf16.gmra.mrb[32].mxu1 %v3243_v40 }
 0x18a   : > { %3096 = vmatprep.mubr.bf16.mxu1 %v3244_v50 }
 0x191   : > { %3097 = vmatmul.mubr.bf16.gmra.mrb[36].mxu1 %v3245_v9 }
 0x192   : > { %3100 = vmatprep.mubr.bf16.mxu1 %v3246_v10 }
 0x199   : > { %3101 = vmatmul.mubr.bf16.gmra.mrb[40].mxu1 %v3247_v38  ;;  %v1533_v38 = vpop.permute.xlu1 %1532 }
 0x19a   : > { %3104 = vmatprep.mubr.bf16.mxu1 %v3248_v21 }
 0x1a1   : > { %3105 = vmatmul.mubr.bf16.gmra.mrb[44].mxu1 %v3249_v46  ;;  %v1528_v46 = vpop.permute.xlu0 %1527 }
 0x1e6   : > { %v3062_v39 = vpop.f32.mrb[4].mxu0 }
 0x1e7   : > { %v1873_v41 = vpop.f32.mrb[5].mxu0  ;;  %v1882_v42 = vadd.f32 %v3062_v39, %v1468_v51 }
 0x1e8   : > { %v3063_v22 = vpop.f32.mrb[6].mxu0  ;;  %v1874_v35 = vadd.f32 %v1873_v41, %v1458_v32 }
 0x1e9   : > { %v1885_v45 = vadd.f32 %v3063_v22, %v1473_v33  ;;  %v1876_v62 = vpop.f32.mrb[7].mxu0 }
 0x1ea   : > { %v1877_v44 = vadd.f32 %v1876_v62, %v1463_v31 }
 0x1eb   : > { %v2812_v47 = vpack.c.bf16 %v1885_v45, %v1882_v42 }
 0x1ec   : > { %v2807_v48 = vpack.c.bf16 %v1877_v44, %v1874_v35 }
 0x1ed   : > { %2931 = vst [vmem:[%s4374_s13 + $0x8] sm:$0xff] %v2812_v47  }
 0x1ee   : > { %2808 = vst [vmem:[%s4374_s13] sm:$0xff] %v2807_v48   ;;  %v3066_v53 = vpop.f32.mrb[8].mxu0 }
 0x1ef   : > { %v1889_v55 = vpop.f32.mrb[9].mxu0  ;;  %v1898_v60 = vadd.f32 %v3066_v53, %v1488_v26 }
 0x1f0   : > { %v3067_v59 = vpop.f32.mrb[10].mxu0  ;;  %v1890_v16 = vadd.f32 %v1889_v55, %v1478_v6 }
 0x1f1   : > { %v1901_v36 = vadd.f32 %v3067_v59, %v1493_v34  ;;  %v1892_v15 = vpop.f32.mrb[11].mxu0 }
 0x1f2   : > { %v1893_v18 = vadd.f32 %v1892_v15, %v1483_v11 }
 0x1f3   : > { %v2822_v28 = vpack.c.bf16 %v1901_v36, %v1898_v60 }
 0x1f4   : > { %v2817_v14 = vpack.c.bf16 %v1893_v18, %v1890_v16 }
 0x1f5   : > { %2933 = vst [vmem:[%s4374_s13 + $0x18] sm:$0xff] %v2822_v28  }
 0x1f6   : > { %2932 = vst [vmem:[%s4374_s13 + $0x10] sm:$0xff] %v2817_v14   ;;  %v3070_v23 = vpop.f32.mrb[12].mxu0 }
 0x1f7   : > { %v1905_v56 = vpop.f32.mrb[13].mxu0  ;;  %v1914_v43 = vadd.f32 %v3070_v23, %v1508_v5 }
 0x1f8   : > { %v3071_v61 = vpop.f32.mrb[14].mxu0  ;;  %v1906_v7 = vadd.f32 %v1905_v56, %v1498_v29 }
 0x1f9   : > { %v1917_v3 = vadd.f32 %v3071_v61, %v1513_v19  ;;  %v1908_v4 = vpop.f32.mrb[15].mxu0 }
 0x1fa   : > { %v1909_v40 = vadd.f32 %v1908_v4, %v1503_v52 }
 0x1fb   : > { %v2832_v50 = vpack.c.bf16 %v1917_v3, %v1914_v43 }
 0x1fc   : > { %v2827_v9 = vpack.c.bf16 %v1909_v40, %v1906_v7 }
 0x1fd   : > { %2935 = vst [vmem:[%s4374_s13 + $0x28] sm:$0xff] %v2832_v50  }
 0x1fe   : > { %2934 = vst [vmem:[%s4374_s13 + $0x20] sm:$0xff] %v2827_v9   ;;  %v3074_v10 = vpop.f32.mrb[16].mxu0 }
 0x1ff   : > { %v1921_v21 = vpop.f32.mrb[17].mxu0  ;;  %v1930_v32 = vadd.f32 %v3074_v10, %v1528_v46 }
 0x200   : > { %v3075_v31 = vpop.f32.mrb[18].mxu0  ;;  %v1922_v11 = vadd.f32 %v1921_v21, %v1518_v37 }
 0x201   : > { %v1933_v33 = vadd.f32 %v3075_v31, %v1533_v38  ;;  %v1924_v51 = vpop.f32.mrb[19].mxu0 }
 0x202   : > { %v1925_v6 = vadd.f32 %v1924_v51, %v1523_v63 }
 0x203   : > { %v2842_v39 = vpack.c.bf16 %v1933_v33, %v1930_v32 }
 0x204   : > { %v2837_v34 = vpack.c.bf16 %v1925_v6, %v1922_v11 }
 0x205   : > { %2937 = vst [vmem:[%s4374_s13 + $0x38] sm:$0xff] %v2842_v39  }
 0x206   : > { %2936 = vst [vmem:[%s4374_s13 + $0x30] sm:$0xff] %v2837_v34  }
 0x207   : > { %3265 = shalt.err (!%p3262_p7)
}
 0x208   : > { %s3266_s13 = scalar_lea.hbm %s4393_s30, 1024  ;;  %s3270_s21 = scalar_lea.hbm %s4668_s9, 4096 }
 0x209   : > { %p3267_p10 = scmp.ne.s32.totalorder %s4393_s30, %s3266_s13  ;;  %p3271_p13 = scmp.lt.u32.totalorder %s4393_s30, %s4668_s9 }
 0x20a   : > { %p3272_p0 = scmp.lt.u32.totalorder %s3270_s21, %s3266_s13  ;;  %p3274_p2 = scmp.lt.u32.totalorder %s3266_s13, %s4393_s30 }
 0x20b   : > { %p3268_p11 = pnand %p3267_p10, %p3577_p8 }
 0x20c   : > { %p3273_p1 = por %p3272_p0, %p3271_p13 }
 0x20d   : > { %p3269_p12 = pneg %p3268_p11 }
 0x20e   : > { %p3275_p3 = por %p3274_p2, %p3273_p1 }
 0x210   : > { %p3276_p4 = pnand %p3275_p3, %p3269_p12 }
 0x212   : > { %3279 = shalt.err (!%p3276_p4)
}
 0x213   : > { %s4680_s10 = smov 64   ;;  %s4682_s18 = smov 128   ;;  %v4424_v41 = vpop.permute.xlu1 %1542  ;;  %v4426_v26 = vpop.permute.xlu0 %1537 }
 0x214   : > { %s4684_s0 = smov 4   ;;  %s4703_s24 = scalar_lea.sflag [#allocation4], %s3627_s14 }
 0x215   : > { %3124 = dma.vmem_to_hbm [thread:$0]  (%p3577_p8), %s4387_s20, 1024, %s4393_s30, %s4703_s24, %s4680_s10, %s4682_s18, %s4684_s0  }
 0x216   : > { %s4437_s20 = scalar_lea.vmem [#allocation8], %s4371_s29  ;;  %s4480_s25 = scalar_lea.hbm %s4671_s12, %s4385_s15 }
 0x217   : > { %v4432_v52 = vpop.permute.xlu1 %1552  ;;  %v4434_v53 = vpop.permute.xlu0 %1547  ;;  %s2385_s30 = sshll.u32 %s4437_s20, 4  ;;  %s3445_s24 = smov [#allocation8]   ;;  %s4472_s30 = int_to_ptr.vmem [resolvable:$true] %s2385_s30 }
 0x218   : > { %s3280_s16 = scalar_lea.vmem %s4472_s30, 1024  ;;  %s3284_s10 = sshll.u32 %s3445_s24, 4  ;;  %s3285_s10 = int_to_ptr.vmem [resolvable:$false] %s3284_s10 }
 0x219   : > { %p3281_p5 = scmp.ne.s32.totalorder %s4472_s30, %s3280_s16  ;;  %s3286_s18 = scalar_lea.vmem %s3285_s10, 2048 }
 0x21a   : > { %p3287_p10 = scmp.lt.s32.totalorder %s4472_s30, %s3285_s10  ;;  %p3288_p11 = scmp.lt.s32.totalorder %s3286_s18, %s3280_s16 }
 0x21b   : > { %v4445_v15 = vpop.permute.xlu0 %1557  ;;  %p3282_p6 = pnand %p3281_p5, %p3577_p8 }
 0x21c   : > { %v3030_v22 = vpop.f32.mrb[0].mxu1  ;;  %p3289_p12 = por %p3288_p11, %p3287_p10 }
 0x21d   : > { %v889_v42 = vpop.f32.mrb[1].mxu1  ;;  %v898_v62 = vadd.f32 %v3030_v22, %v4344_v12  ;;  %p3283_p7 = pneg %p3282_p6 }
 0x21e   : > { %v3031_v45 = vpop.f32.mrb[2].mxu1  ;;  %v890_v47 = vadd.f32 %v889_v42, %v4079_v25  ;;  %v4441_v25 = vpop.permute.xlu1 %1562 }
 0x21f   : > { %v901_v35 = vadd.f32 %v3031_v45, %v4342_v2  ;;  %v892_v44 = vpop.f32.mrb[3].mxu1  ;;  %p3290_p13 = pnand %p3289_p12, %p3283_p7 }
 0x220   : > { %v893_v48 = vadd.f32 %v892_v44, %v4077_v24 }
 0x221   : > { %v2772_v29 = vpack.c.bf16 %v901_v35, %v898_v62 }
 0x222   : > { %v2767_v55 = vpack.c.bf16 %v893_v48, %v890_v47  ;;  %v4451_v14 = vpop.permute.xlu1 %1572 }
 0x223   : > { %2924 = vst [vmem:[%s4437_s20 + $0x8] sm:$0xff] %v2772_v29  }
 0x224   : > { %2768 = vst [vmem:[%s4437_s20] sm:$0xff] %v2767_v55   ;;  %v3034_v2 = vpop.f32.mrb[4].mxu1 }
 0x225   : > { %v905_v12 = vpop.f32.mrb[5].mxu1  ;;  %v914_v24 = vadd.f32 %v3034_v2, %v4352_v57  ;;  %v4453_v57 = vpop.permute.xlu0 %1567 }
 0x226   : > { %v3035_v59 = vpop.f32.mrb[6].mxu1  ;;  %v906_v16 = vadd.f32 %v905_v12, %v4348_v13  ;;  %v4459_v4 = vpop.permute.xlu1 %1582 }
 0x227   : > { %v917_v60 = vadd.f32 %v3035_v59, %v4350_v54  ;;  %v908_v36 = vpop.f32.mrb[7].mxu1 }
 0x228   : > { %v909_v18 = vadd.f32 %v908_v36, %v4346_v8 }
 0x229   : > { %v2782_v19 = vpack.c.bf16 %v917_v60, %v914_v24  ;;  %v4462_v37 = vpop.permute.xlu0 %1577 }
 0x22a   : > { %v2777_v28 = vpack.c.bf16 %v909_v18, %v906_v16  ;;  %v4470_v10 = vpop.permute.xlu1 %1592 }
 0x22b   : > { %2926 = vst [vmem:[%s4437_s20 + $0x18] sm:$0xff] %v2782_v19  }
 0x22c   : > { %2925 = vst [vmem:[%s4437_s20 + $0x10] sm:$0xff] %v2777_v28   ;;  %v3038_v5 = vpop.f32.mrb[8].mxu1 }
 0x22d   : > { %v921_v23 = vpop.f32.mrb[9].mxu1  ;;  %v930_v56 = vadd.f32 %v3038_v5, %v4360_v0  ;;  %v4474_v21 = vpop.permute.xlu0 %1587 }
 0x22e   : > { %v3039_v54 = vpop.f32.mrb[10].mxu1  ;;  %v922_v8 = vadd.f32 %v921_v23, %v4356_v58 }
 0x22f   : > { %v933_v13 = vadd.f32 %v3039_v54, %v4358_v17  ;;  %v924_v61 = vpop.f32.mrb[11].mxu1 }
 0x230   : > { %v925_v63 = vadd.f32 %v924_v61, %v4354_v49 }
 0x231   : > { %v2792_v43 = vpack.c.bf16 %v933_v13, %v930_v56 }
 0x232   : > { %v2787_v3 = vpack.c.bf16 %v925_v63, %v922_v8 }
 0x233   : > { %2928 = vst [vmem:[%s4437_s20 + $0x28] sm:$0xff] %v2792_v43  }
 0x234   : > { %2927 = vst [vmem:[%s4437_s20 + $0x20] sm:$0xff] %v2787_v3   ;;  %v3042_v7 = vpop.f32.mrb[12].mxu1 }
 0x235   : > { %v937_v0 = vpop.f32.mrb[13].mxu1  ;;  %v946_v58 = vadd.f32 %v3042_v7, %v4368_v30 }
 0x236   : > { %v3043_v17 = vpop.f32.mrb[14].mxu1  ;;  %v938_v50 = vadd.f32 %v937_v0, %v4364_v1 }
 0x237   : > { %v949_v49 = vadd.f32 %v3043_v17, %v4366_v27  ;;  %v940_v40 = vpop.f32.mrb[15].mxu1 }
 0x238   : > { %v941_v9 = vadd.f32 %v940_v40, %v4362_v20 }
 0x239   : > { %v2802_v38 = vpack.c.bf16 %v949_v49, %v946_v58 }
 0x23a   : > { %v2797_v46 = vpack.c.bf16 %v941_v9, %v938_v50 }
 0x23b   : > { %2930 = vst [vmem:[%s4437_s20 + $0x38] sm:$0xff] %v2802_v38  }
 0x23c   : > { %2929 = vst [vmem:[%s4437_s20 + $0x30] sm:$0xff] %v2797_v46   ;;  %v3078_v1 = vpop.f32.mrb[16].mxu1 }
 0x23d   : > { %v1937_v20 = vpop.f32.mrb[17].mxu1 }
 0x23e   : > { %3293 = shalt.err (!%p3290_p13)
}
 0x23f   : > { %s3294_s20 = scalar_lea.hbm %s4480_s25, 1024  ;;  %s3298_s24 = scalar_lea.hbm %s4671_s12, 4096 }
 0x240   : > { %p3295_p0 = scmp.ne.s32.totalorder %s4480_s25, %s3294_s20  ;;  %p3299_p3 = scmp.lt.u32.totalorder %s4480_s25, %s4671_s12 }
 0x241   : > { %p3300_p4 = scmp.lt.u32.totalorder %s3298_s24, %s3294_s20  ;;  %p3302_p6 = scmp.lt.u32.totalorder %s3294_s20, %s4480_s25 }
 0x242   : > { %p3296_p1 = pnand %p3295_p0, %p3577_p8 }
 0x243   : > { %p3301_p5 = por %p3300_p4, %p3299_p3 }
 0x244   : > { %p3297_p2 = pneg %p3296_p1 }
 0x245   : > { %p3303_p7 = por %p3302_p6, %p3301_p5 }
 0x247   : > { %p3304_p10 = pnand %p3303_p7, %p3297_p2 }
 0x249   : > { %3307 = shalt.err (!%p3304_p10)
}
 0x24a   : > { %s4704_s18 = smov 128   ;;  %s4705_s16 = smov 64   ;;  %v3079_v27 = vpop.f32.mrb[18].mxu1  ;;  %v1603_v30 = vpop.permute.xlu1 %1602  ;;  %v1946_v31 = vadd.f32 %v3078_v1, %v4434_v53  ;;  %v1938_v11 = vadd.f32 %v1937_v20, %v4426_v26 }
 0x24b   : > { %s4706_s1 = scalar_lea.sflag [#allocation9], %s3627_s14  ;;  %v1949_v32 = vadd.f32 %v3079_v27, %v4432_v52  ;;  %v1940_v33 = vpop.f32.mrb[19].mxu1  ;;  %v1598_v51 = vpop.permute.xlu0 %1597  ;;  %s4516_s21 = scalar_lea.vmem [#allocation5], %s4371_s29 }
 0x24c   : > { %3127 = dma.vmem_to_hbm [thread:$0]  (%p3577_p8), %s4472_s30, 1024, %s4480_s25, %s4706_s1, %s4705_s16, %s4704_s18, %s4684_s0   ;;  %v1941_v6 = vadd.f32 %v1940_v33, %v4424_v41  ;;  %v3082_v22 = vpop.f32.mrb[20].mxu1 }
 0x24d   : > { %v2852_v39 = vpack.c.bf16 %v1949_v32, %v1946_v31  ;;  %v1953_v45 = vpop.f32.mrb[21].mxu1  ;;  %v1962_v44 = vadd.f32 %v3082_v22, %v4453_v57  ;;  %s2351_s1 = sshll.u32 %s4516_s21, 4  ;;  %s4707_s14 = sadd.s32 4294967295, %s3438_s28   ;;  %s4543_s1 = int_to_ptr.vmem [resolvable:$true] %s2351_s1 }
 0x24e   : > { %v2847_v34 = vpack.c.bf16 %v1941_v6, %v1938_v11  ;;  %v1613_v42 = vpop.permute.xlu1 %1612  ;;  %v3083_v35 = vpop.f32.mrb[22].mxu1  ;;  %v1954_v47 = vadd.f32 %v1953_v45, %v4445_v15  ;;  %s4541_s30 = sand.u32 1, %s4707_s14   ;;  %s4708_s19 = sld [smem:[#allocation21_spill]] }
 0x24f   : > { %2938 = vst [vmem:[%s4516_s21 + $0x8] sm:$0xff] %v2852_v39   ;;  %v1608_v62 = vpop.permute.xlu0 %1607  ;;  %v1965_v26 = vadd.f32 %v3083_v35, %v4451_v14  ;;  %v1956_v41 = vpop.f32.mrb[23].mxu1  ;;  %s3308_s10 = scalar_lea.vmem %s4543_s1, 1024  ;;  %s3446_s14 = smov [#allocation5]  }
 0x250   : > { %2848 = vst [vmem:[%s4516_s21] sm:$0xff] %v2847_v34   ;;  %v1957_v48 = vadd.f32 %v1956_v41, %v4441_v25  ;;  %v3086_v2 = vpop.f32.mrb[24].mxu1  ;;  %p3309_p11 = scmp.ne.s32.totalorder %s4543_s1, %s3308_s10  ;;  %s3312_s0 = sshll.u32 %s3446_s14, 4  ;;  %s3313_s0 = int_to_ptr.vmem [resolvable:$false] %s3312_s0 }
 0x251   : > { %v2862_v52 = vpack.c.bf16 %v1965_v26, %v1962_v44  ;;  %v1969_v12 = vpop.f32.mrb[25].mxu1  ;;  %v1978_v24 = vadd.f32 %v3086_v2, %v4474_v21  ;;  %s3314_s2 = scalar_lea.vmem %s3313_s0, 2048  ;;  %p3315_p0 = scmp.lt.s32.totalorder %s4543_s1, %s3313_s0 }
 0x252   : > { %v2857_v29 = vpack.c.bf16 %v1957_v48, %v1954_v47  ;;  %v4524_v53 = vpop.permute.xlu1 %1622  ;;  %v3087_v59 = vpop.f32.mrb[26].mxu1  ;;  %v1970_v25 = vadd.f32 %v1969_v12, %v4462_v37  ;;  %p3310_p12 = pnand %p3309_p11, %p3577_p8  ;;  %p3316_p1 = scmp.lt.s32.totalorder %s3314_s2, %s3308_s10 }
 0x253   : > { %2940 = vst [vmem:[%s4516_s21 + $0x18] sm:$0xff] %v2862_v52   ;;  %v4527_v55 = vpop.permute.xlu0 %1617  ;;  %v1981_v60 = vadd.f32 %v3087_v59, %v4470_v10  ;;  %v1972_v36 = vpop.f32.mrb[27].mxu1 }
 0x254   : > { %2939 = vst [vmem:[%s4516_s21 + $0x10] sm:$0xff] %v2857_v29   ;;  %v1973_v15 = vadd.f32 %v1972_v36, %v4459_v4  ;;  %v3090_v5 = vpop.f32.mrb[28].mxu1  ;;  %s4549_s13 = scalar_lea.hbm %s4708_s19, %s4385_s15  ;;  %p3311_p13 = pneg %p3310_p12 }
 0x255   : > { %v2872_v18 = vpack.c.bf16 %v1981_v60, %v1978_v24  ;;  %v1985_v14 = vpop.f32.mrb[29].mxu1  ;;  %v1994_v54 = vadd.f32 %v3090_v5, %v1608_v62  ;;  %p3317_p2 = por %p3316_p1, %p3315_p0 }
 0x256   : > { %v1633_v16 = vpop.permute.xlu1 %1632  ;;  %v2867_v28 = vpack.c.bf16 %v1973_v15, %v1970_v25  ;;  %v3091_v23 = vpop.f32.mrb[30].mxu1  ;;  %v1986_v8 = vadd.f32 %v1985_v14, %v1598_v51 }
 0x257   : > { %v1628_v19 = vpop.permute.xlu0 %1627  ;;  %2942 = vst [vmem:[%s4516_s21 + $0x28] sm:$0xff] %v2872_v18   ;;  %v1997_v56 = vadd.f32 %v3091_v23, %v1613_v42  ;;  %v1988_v13 = vpop.f32.mrb[31].mxu1  ;;  %p3318_p3 = pnand %p3317_p2, %p3311_p13 }
 0x258   : > { %2941 = vst [vmem:[%s4516_s21 + $0x20] sm:$0xff] %v2867_v28   ;;  %v1989_v63 = vadd.f32 %v1988_v13, %v1603_v30 }
 0x259   : > { %v2882_v43 = vpack.c.bf16 %v1997_v56, %v1994_v54 }
 0x25a   : > { %v4537_v57 = vpop.permute.xlu1 %1642  ;;  %v2877_v3 = vpack.c.bf16 %v1989_v63, %v1986_v8 }
 0x25b   : > { %v1638_v61 = vpop.permute.xlu0 %1637  ;;  %2944 = vst [vmem:[%s4516_s21 + $0x38] sm:$0xff] %v2882_v43  }
 0x25c   : > { %2943 = vst [vmem:[%s4516_s21 + $0x30] sm:$0xff] %v2877_v3   ;;  %v3094_v4 = vpop.f32.mrb[32].mxu1 }
 0x25d   : > { %v2001_v7 = vpop.f32.mrb[33].mxu1 }
 0x25e   : > { %v1653_v37 = vpop.permute.xlu1 %1652 }
 0x25f   : > { %3321 = shalt.err (!%p3318_p3)
}
 0x260   : > { %s3322_s21 = scalar_lea.hbm %s4549_s13, 1024  ;;  %s3326_s14 = scalar_lea.hbm %s4708_s19, 4096 }
 0x261   : > { %p3323_p4 = scmp.ne.s32.totalorder %s4549_s13, %s3322_s21  ;;  %p3327_p7 = scmp.lt.u32.totalorder %s4549_s13, %s4708_s19 }
 0x262   : > { %p3328_p10 = scmp.lt.u32.totalorder %s3326_s14, %s3322_s21  ;;  %p3330_p12 = scmp.lt.u32.totalorder %s3322_s21, %s4549_s13 }
 0x263   : > { %p3324_p5 = pnand %p3323_p4, %p3577_p8 }
 0x264   : > { %p3329_p11 = por %p3328_p10, %p3327_p7 }
 0x265   : > { %p3325_p6 = pneg %p3324_p5 }
 0x266   : > { %p3331_p13 = por %p3330_p12, %p3329_p11 }
 0x268   : > { %p3332_p0 = pnand %p3331_p13, %p3325_p6 }
 0x26a   : > { %3335 = shalt.err (!%p3332_p0)
}
 0x26b   : > { %s4709_s2 = smov 4   ;;  %s4710_s10 = scalar_lea.sflag [#allocation6], %s4541_s30  ;;  %v1648_v0 = vpop.permute.xlu0 %1647  ;;  %v3095_v17 = vpop.f32.mrb[34].mxu1  ;;  %v2010_v58 = vadd.f32 %v3094_v4, %v1628_v19  ;;  %v2002_v50 = vadd.f32 %v2001_v7, %v4527_v55 }
 0x26c   : > { %3125 = dma.vmem_to_hbm [thread:$0]  (%p3577_p8), %s4543_s1, 1024, %s4549_s13, %s4710_s10, %s4705_s16, %s4704_s18, %s4709_s2   ;;  %v2013_v49 = vadd.f32 %v3095_v17, %v1633_v16  ;;  %v2004_v40 = vpop.f32.mrb[35].mxu1  ;;  %v1663_v21 = vpop.permute.xlu1 %1662 }
 0x26d   : > { %v2005_v9 = vadd.f32 %v2004_v40, %v4524_v53  ;;  %s4583_s24 = scalar_lea.vmem [#allocation7], %s4371_s29  ;;  %v3098_v1 = vpop.f32.mrb[36].mxu1  ;;  %s4711_s21 = sld [smem:[#allocation22_spill]] }
 0x26e   : > { %v2892_v10 = vpack.c.bf16 %v2013_v49, %v2010_v58  ;;  %v2017_v20 = vpop.f32.mrb[37].mxu1  ;;  %v2026_v30 = vadd.f32 %v3098_v1, %v1648_v0  ;;  %s2368_s29 = sshll.u32 %s4583_s24, 4  ;;  %s3447_s0 = smov [#allocation7]   ;;  %s4593_s29 = int_to_ptr.vmem [resolvable:$true] %s2368_s29 }
 0x26f   : > { %v2887_v38 = vpack.c.bf16 %v2005_v9, %v2002_v50  ;;  %v1658_v46 = vpop.permute.xlu0 %1657  ;;  %v3099_v27 = vpop.f32.mrb[38].mxu1  ;;  %v2018_v33 = vadd.f32 %v2017_v20, %v1638_v61  ;;  %s3336_s14 = scalar_lea.vmem %s4593_s29, 1024  ;;  %s3340_s10 = sshll.u32 %s3447_s0, 4  ;;  %s3341_s10 = int_to_ptr.vmem [resolvable:$false] %s3340_s10 }
 0x270   : > { %2945 = vst [vmem:[%s4583_s24 + $0x8] sm:$0xff] %v2892_v10   ;;  %v2029_v31 = vadd.f32 %v3099_v27, %v1653_v37  ;;  %v2020_v32 = vpop.f32.mrb[39].mxu1  ;;  %v1673_v11 = vpop.permute.xlu1 %1672  ;;  %p3337_p1 = scmp.ne.s32.totalorder %s4593_s29, %s3336_s14  ;;  %s3342_s3 = scalar_lea.vmem %s3341_s10, 2048 }
 0x271   : > { %2888 = vst [vmem:[%s4583_s24] sm:$0xff] %v2887_v38   ;;  %v2021_v51 = vadd.f32 %v2020_v32, %v4537_v57  ;;  %v3102_v22 = vpop.f32.mrb[40].mxu1  ;;  %p3343_p4 = scmp.lt.s32.totalorder %s4593_s29, %s3341_s10  ;;  %p3344_p5 = scmp.lt.s32.totalorder %s3342_s3, %s3336_s14 }
 0x272   : > { %v2902_v6 = vpack.c.bf16 %v2029_v31, %v2026_v30  ;;  %v2033_v42 = vpop.f32.mrb[41].mxu1  ;;  %p3338_p2 = pnand %p3337_p1, %p3577_p8 }
 0x273   : > { %v1668_v39 = vpop.permute.xlu0 %1667  ;;  %v2897_v34 = vpack.c.bf16 %v2021_v51, %v2018_v33  ;;  %v3103_v45 = vpop.f32.mrb[42].mxu1  ;;  %v2034_v47 = vadd.f32 %v2033_v42, %v1658_v46  ;;  %s4712_s20 = smov %s4711_s21  ;;  %s4599_s25 = scalar_lea.hbm %s4711_s21, %s4385_s15 }
 0x274   : > { %2947 = vst [vmem:[%s4583_s24 + $0x18] sm:$0xff] %v2902_v6   ;;  %v1683_v62 = vpop.permute.xlu1 %1682  ;;  %v2042_v35 = vadd.f32 %v3102_v22, %v1668_v39  ;;  %v2045_v44 = vadd.f32 %v3103_v45, %v1673_v11  ;;  %v2036_v26 = vpop.f32.mrb[43].mxu1  ;;  %p3339_p3 = pneg %p3338_p2  ;;  %p3345_p6 = por %p3344_p5, %p3343_p4 }
 0x275   : > { %2946 = vst [vmem:[%s4583_s24 + $0x10] sm:$0xff] %v2897_v34   ;;  %v2037_v48 = vadd.f32 %v2036_v26, %v1663_v21  ;;  %v3106_v53 = vpop.f32.mrb[44].mxu1 }
 0x276   : > { %v2912_v52 = vpack.c.bf16 %v2045_v44, %v2042_v35  ;;  %v2049_v2 = vpop.f32.mrb[45].mxu1  ;;  %p3346_p7 = pnand %p3345_p6, %p3339_p3 }
 0x277   : > { %v1678_v41 = vpop.permute.xlu0 %1677  ;;  %v2907_v29 = vpack.c.bf16 %v2037_v48, %v2034_v47  ;;  %v3107_v59 = vpop.f32.mrb[46].mxu1 }
 0x278   : > { %2949 = vst [vmem:[%s4583_s24 + $0x28] sm:$0xff] %v2912_v52   ;;  %v1693_v55 = vpop.permute.xlu1 %1692  ;;  %v2052_v36 = vpop.f32.mrb[47].mxu1  ;;  %v2050_v25 = vadd.f32 %v2049_v2, %v1678_v41 }
 0x279   : > { %2948 = vst [vmem:[%s4583_s24 + $0x20] sm:$0xff] %v2907_v29   ;;  %v2061_v60 = vadd.f32 %v3107_v59, %v1693_v55  ;;  %v2053_v15 = vadd.f32 %v2052_v36, %v1683_v62 }
 0x27b   : > { %v1688_v12 = vpop.permute.xlu0 %1687  ;;  %v2917_v18 = vpack.c.bf16 %v2053_v15, %v2050_v25 }
 0x27c   : > { %v2058_v24 = vadd.f32 %v3106_v53, %v1688_v12 }
 0x27d   : > { %2950 = vst [vmem:[%s4583_s24 + $0x30] sm:$0xff] %v2917_v18  }
 0x27e   : > { %v2922_v16 = vpack.c.bf16 %v2061_v60, %v2058_v24 }
 0x280   : > { %2951 = vst [vmem:[%s4583_s24 + $0x38] sm:$0xff] %v2922_v16  }
 0x281   : > { %3349 = shalt.err (!%p3346_p7)
}
 0x282   : > { %s3350_s15 = scalar_lea.hbm %s4599_s25, 1024  ;;  %s3354_s13 = scalar_lea.hbm %s4712_s20, 4096 }
 0x283   : > { %p3351_p10 = scmp.ne.s32.totalorder %s4599_s25, %s3350_s15  ;;  %p3355_p13 = scmp.lt.u32.totalorder %s4599_s25, %s4712_s20 }
 0x284   : > { %p3356_p0 = scmp.lt.u32.totalorder %s3354_s13, %s3350_s15  ;;  %p3358_p2 = scmp.lt.u32.totalorder %s3350_s15, %s4599_s25 }
 0x285   : > { %p3352_p11 = pnand %p3351_p10, %p3577_p8 }
 0x286   : > { %p3357_p1 = por %p3356_p0, %p3355_p13 }
 0x287   : > { %p3353_p12 = pneg %p3352_p11 }
 0x288   : > { %p3359_p3 = por %p3358_p2, %p3357_p1 }
 0x28a   : > { %p3360_p4 = pnand %p3359_p3, %p3353_p12 }
 0x28c   : > { %3363 = shalt.err (!%p3360_p4)
}
 0x28d   : > { %s4713_s3 = scalar_lea.sflag [#allocation6], %s4541_s30 }
 0x28e   : > { %3126 = dma.vmem_to_hbm [thread:$0]  (%p3577_p8), %s4593_s29, 1024, %s4599_s25, %s4713_s3, %s4705_s16, %s4704_s18, %s4709_s2  }
 0x28f PF: > { %s4714_s14 = sld [smem:[#allocation13_spill]]  ;;  %p3145_p5 = scmp.ge.s32.totalorder %s3438_s28, 2 }
 0x291   : > { %p3133_p6 = pnand %p3145_p5, %p3581_p9 }
 0x295   : > { %s2400_s24 = sand.u32 1, %s4714_s14  }
 0x296   : > { %s2401_s15 = scalar_lea.sflag [#allocation4], %s2400_s24 }
 0x297   : > { %3397 = dma.done.wait (!%p3133_p6), %s2401_s15, 1024  }
 0x298   : > { %3399 = vsyncadd (!%p3133_p6), %s2401_s15, 4294966272  ;;  %s4716_s17 = sadd.s32 4294967294, %s3438_s28  }
 0x299   : > { %s2409_s1 = sand.u32 1, %s4716_s17  }
 0x29a   : > { %s2410_s13 = scalar_lea.sflag [#allocation6], %s2409_s1 }
 0x29b   : > { %3401 = dma.done.wait (!%p3133_p6), %s2410_s13, 2048  }
 0x29c   : > { %3403 = vsyncadd (!%p3133_p6), %s2410_s13, 4294965248  ;;  %s2428_s30 = scalar_lea.sflag [#allocation9], %s2400_s24 }
 0x29d   : > { %3405 = dma.done.wait (!%p3133_p6), %s2428_s30, 1024  }
 0x29e   : > { %3407 = vsyncadd (!%p3133_p6), %s2428_s30, 4294966272  ;;  %s32_s28 = sadd.s32 1, %s3438_s28   ;;  %s4717_s18 = sld [smem:[#allocation14_spill]] }
 0x29f   : > { %p29_p8 = scmp.ge.s32.totalorder %s32_s28, 6   ;;  %s4718_s16 = sld [smem:[#allocation15_spill]] }
 0x2a0   : > { %s4719_s21 = smov %s3414_s22  ;;  %s4720_s22 = smov %s3418_s23 }
 0x2a1   : > { %s4721_s23 = smov %s3589_s11  ;;  %s4722_s24 = smov %s3430_s26 }
 0x2a2   : > { %s4723_s25 = smov %s3434_s27  ;;  %31 = sbr.rel (!%p29_p8) target bundleno = 16 (0x10), region = 183 }
 0x2a4   : > { %s4724_s26 = smov %s4717_s18 }
 0x2a5   : > { %s4725_s27 = smov %s4718_s16 }
 0x2a9   :  { %2433 = vsyncpa [#allocation4], 1 }
 0x2aa   :  { %2435 = vsyncpa [#allocation4 + $0x1], 1 }
 0x2ab   :  { %2436 = vsyncpa [#allocation6], 1 }
 0x2ac   :  { %2438 = vsyncpa [#allocation6 + $0x1], 1 }
 0x2ad   :  { %2439 = vsyncpa [#allocation9], 1 }
 0x2ae   :  { %2441 = vsyncpa [#allocation9 + $0x1], 1 }

</bundles_post_ra>
